<compile_context>
chip_gen: v7x
topology: tpu7x:2x2x1
jax: 0.10.0
libtpu: 0.0.40
codegen_flags: <defaults>
</compile_context>

<pallas_src>
import functools
import math

import jax
import jax.numpy as jnp
from jax.experimental import pallas as pl
from jax.experimental.pallas import tpu as pltpu


def _encoder_layer_kernel(n_heads,
                          x_ref,
                          wqkv_ref, bqkv_ref, wo_ref, bo_ref,
                          g1_ref, be1_ref,
                          w1_ref, bc1_ref, w2_ref, bc2_ref,
                          g2_ref, be2_ref,
                          o_ref):
    bt, L, D = x_ref.shape
    H = n_heads
    hd = D // H
    cd = wqkv_ref.dtype            # matmul compute dtype (bf16)
    M = bt * L

    x2 = x_ref[...].reshape(M, D)                  # (M, D) bf16
    x_f32 = x2.astype(jnp.float32)                 # residual / LN copy

    # --- fused QKV projection: one (M, D) @ (D, 3D) matmul -------------------
    # The 1/sqrt(hd) attention scale is folded into the q slice of wqkv/bqkv.
    qkv = jnp.dot(x2, wqkv_ref[...],
                  preferred_element_type=jnp.float32) + bqkv_ref[...]   # (M, 3D)

    def to_heads(t):                               # (M, D) -> (bt*H, L, hd)
        return (t.reshape(bt, L, H, hd)
                 .transpose(0, 2, 1, 3)
                 .reshape(bt * H, L, hd))

    q = to_heads(qkv[:, :D]).astype(cd)
    k = to_heads(qkv[:, D:2 * D]).astype(cd)
    v = to_heads(qkv[:, 2 * D:]).astype(cd)

    # --- attention (no mask; scale already folded into q) --------------------
    s = jnp.einsum('bqd,bkd->bqk', q, k,
                   preferred_element_type=jnp.float32)          # (bt*H, L, L)
    s = s - jnp.max(s, axis=-1, keepdims=True)
    p = jnp.exp(s)
    denom = jnp.sum(p, axis=-1, keepdims=True)                  # (bt*H, L, 1)

    # Deferred softmax normalization: scale the (small) context, not p.
    ctx = jnp.einsum('bqk,bkd->bqd', p.astype(cd), v,
                     preferred_element_type=jnp.float32)        # (bt*H, L, hd)
    ctx = ctx * pl.reciprocal(denom, approx=True)

    # Head concat folded into one (M, D) @ (D, D) output projection.
    ctx = (ctx.reshape(bt, H, L, hd)
              .transpose(0, 2, 1, 3)
              .reshape(M, D))
    attn = jnp.dot(ctx.astype(cd), wo_ref[...],
                   preferred_element_type=jnp.float32) + bo_ref[...]    # (M, D)

    # --- residual + LayerNorm 1 (dropout == identity) ------------------------
    x1 = x_f32 + attn
    mu = jnp.mean(x1, axis=-1, keepdims=True)
    var = jnp.mean((x1 - mu) ** 2, axis=-1, keepdims=True)
    x1 = (x1 - mu) * jax.lax.rsqrt(var + 1e-5) * g1_ref[...] + be1_ref[...]

    # --- feed-forward: Conv1d(k=1) -> ReLU -> Conv1d(k=1) == two matmuls -----
    y = jnp.dot(x1.astype(cd), w1_ref[...],
                preferred_element_type=jnp.float32) + bc1_ref[...]
    y = jnp.maximum(y, 0.0)
    y = jnp.dot(y.astype(cd), w2_ref[...],
                preferred_element_type=jnp.float32) + bc2_ref[...]

    # --- residual + LayerNorm 2 ----------------------------------------------
    z = x1 + y
    mu2 = jnp.mean(z, axis=-1, keepdims=True)
    var2 = jnp.mean((z - mu2) ** 2, axis=-1, keepdims=True)
    out = (z - mu2) * jax.lax.rsqrt(var2 + 1e-5) * g2_ref[...] + be2_ref[...]
    o_ref[...] = out.reshape(bt, L, D)


def _vmem_capacity_bytes():
    try:
        info = pltpu.get_tpu_info()
        cap = getattr(info, "vmem_capacity_bytes", None)
        if cap:
            return int(cap)
    except Exception:
        pass
    return 64 * 1024 * 1024      # conservative default (v7x per-TensorCore VMEM)


def _step_vmem_bytes(bt, L, D, d_ff, H, cd_itemsize):
    """Rough per-grid-step VMEM footprint (weights double-buffered by default)."""
    weights = 2 * cd_itemsize * (3 * D * D + D * D + 2 * D * d_ff)
    io = 2 * (bt * L * D * cd_itemsize + bt * L * D * 4)   # double-buffered x/out
    act = 4 * bt * (L * 3 * D          # fused qkv (f32)
                    + 3 * L * D        # head-split q/k/v relayouts
                    + 2 * H * L * L    # scores + exp
                    + 3 * L * D        # ctx / attn / residual slabs
                    + L * d_ff         # FFN hidden
                    + 2 * L * D)       # x1 / z
    return weights + io + act


def _pick_batch_block(B, L, D, d_ff, H, budget, cd_itemsize):
    """Largest batch block that fits the VMEM budget; prefer >= 2 grid steps
    (so the 'parallel' axis can shard across v7x's two TensorCores)."""
    divisors = [bt for bt in range(B, 0, -1) if B % bt == 0]
    fitting = [bt for bt in divisors
               if _step_vmem_bytes(bt, L, D, d_ff, H, cd_itemsize) <= budget]
    if not fitting:
        return 1
    multi = [bt for bt in fitting if B // bt >= 2]
    return multi[0] if multi else fitting[0]


def _full_spec(shape):
    # Whole-array block, replicated across the batch grid.
    return pl.BlockSpec(shape, lambda i: (0,) * len(shape))


def encoder_layer(x, params, n_heads, compute_dtype=jnp.bfloat16):
    """Pallas forward pass of EncoderLayer. `params` uses PyTorch layouts."""
    B, L, D = x.shape
    H = n_heads
    hd = D // H
    d_ff = params["w1"].shape[0]
    cd = compute_dtype
    f32 = jnp.float32
    scale = 1.0 / math.sqrt(hd)

    # --- one-time wrapper-side relayout --------------------------------------
    # QKV packed into a single (D, 3D) bf16 weight; 1/sqrt(hd) folded into the
    # q slice of the weight AND its bias so the kernel does no score scaling.
    wqkv = jnp.concatenate(
        [jnp.transpose(params["wq"] * scale),
         jnp.transpose(params["wk"]),
         jnp.transpose(params["wv"])], axis=1).astype(cd)            # (D, 3D)
    bqkv = jnp.concatenate(
        [params["bq"] * scale, params["bk"], params["bv"]]
    ).reshape(1, 3 * D).astype(f32)
    wo = jnp.transpose(params["wo"]).astype(cd)                      # (D, D)
    bo = params["bo"].reshape(1, D).astype(f32)
    g1 = params["g1"].reshape(1, D).astype(f32)
    be1 = params["beta1"].reshape(1, D).astype(f32)
    w1 = jnp.transpose(params["w1"]).astype(cd)                      # (D, d_ff)
    bc1 = params["bc1"].reshape(1, d_ff).astype(f32)
    w2 = jnp.transpose(params["w2"]).astype(cd)                      # (d_ff, D)
    bc2 = params["bc2"].reshape(1, D).astype(f32)
    g2 = params["g2"].reshape(1, D).astype(f32)
    be2 = params["beta2"].reshape(1, D).astype(f32)

    cd_itemsize = jnp.dtype(cd).itemsize
    vmem_cap = _vmem_capacity_bytes()
    budget = int(vmem_cap * 0.75)
    bt = _pick_batch_block(B, L, D, d_ff, H, budget, cd_itemsize)
    grid = (B // bt,)
    vmem_limit = int(min(budget,
                         max(32 * 1024 * 1024,
                             int(1.25 * _step_vmem_bytes(bt, L, D, d_ff, H,
                                                         cd_itemsize)))))

    weight_args = (wqkv, bqkv, wo, bo, g1, be1, w1, bc1, w2, bc2, g2, be2)
    in_specs = [pl.BlockSpec((bt, L, D), lambda i: (i, 0, 0))]
    in_specs += [_full_spec(w.shape) for w in weight_args]

    flops = 2 * B * L * (4 * D * D + 2 * L * D + 2 * D * d_ff)
    transcendentals = B * H * L * L
    bytes_accessed = (B * L * D * (cd_itemsize + 4)
                      + (4 * D * D + 2 * D * d_ff) * cd_itemsize
                      + (9 * D + 2 * d_ff) * 4)

    kernel = functools.partial(_encoder_layer_kernel, n_heads)

    return pl.pallas_call(
        kernel,
        out_shape=jax.ShapeDtypeStruct((B, L, D), jnp.float32),
        grid=grid,
        in_specs=in_specs,
        out_specs=pl.BlockSpec((bt, L, D), lambda i: (i, 0, 0)),
        compiler_params=pltpu.CompilerParams(
            dimension_semantics=("parallel",),
            vmem_limit_bytes=vmem_limit),
        cost_estimate=pl.CostEstimate(
            flops=int(flops),
            transcendentals=int(transcendentals),
            bytes_accessed=int(bytes_accessed)),
    )(x.astype(cd), *weight_args)


def make_params(key, d_model, d_ff):
    """Parameters in PyTorch layouts: Linear (out, in), 1-D biases / LN params."""
    ks = jax.random.split(key, 12)
    s = 0.05
    return {
        "wq": jax.random.normal(ks[0], (d_model, d_model), jnp.float32) * s,
        "wk": jax.random.normal(ks[1], (d_model, d_model), jnp.float32) * s,
        "wv": jax.random.normal(ks[2], (d_model, d_model), jnp.float32) * s,
        "bq": jax.random.normal(ks[3], (d_model,), jnp.float32) * s,
        "bk": jax.random.normal(ks[4], (d_model,), jnp.float32) * s,
        "bv": jax.random.normal(ks[5], (d_model,), jnp.float32) * s,
        "wo": jax.random.normal(ks[6], (d_model, d_model), jnp.float32) * s,
        "bo": jax.random.normal(ks[7], (d_model,), jnp.float32) * s,
        "g1": jnp.ones((d_model,), jnp.float32),
        "beta1": jnp.zeros((d_model,), jnp.float32),
        "w1": jax.random.normal(ks[8], (d_ff, d_model), jnp.float32) * s,
        "bc1": jax.random.normal(ks[9], (d_ff,), jnp.float32) * s,
        "w2": jax.random.normal(ks[10], (d_model, d_ff), jnp.float32) * s,
        "bc2": jax.random.normal(ks[11], (d_model,), jnp.float32) * s,
        "g2": jnp.ones((d_model,), jnp.float32),
        "beta2": jnp.zeros((d_model,), jnp.float32),
    }


def encoder_layer_reference(x, params, n_heads):
    """Pure-JAX f32 reference with the exact PyTorch semantics (eval mode)."""
    B, L, D = x.shape
    H = n_heads
    hd = D // H
    q = jnp.einsum('bld,ed->ble', x, params["wq"]) + params["bq"]
    k = jnp.einsum('bld,ed->ble', x, params["wk"]) + params["bk"]
    v = jnp.einsum('bld,ed->ble', x, params["wv"]) + params["bv"]

    def split(t):
        return t.reshape(B, L, H, hd).transpose(0, 2, 1, 3)

    qh, kh, vh = split(q), split(k), split(v)
    s = jnp.einsum('bhqd,bhkd->bhqk', qh, kh) / math.sqrt(hd)
    p = jax.nn.softmax(s, axis=-1)
    ctx = jnp.einsum('bhqk,bhkd->bhqd', p, vh)
    ctx = ctx.transpose(0, 2, 1, 3).reshape(B, L, D)
    attn = jnp.einsum('bld,ed->ble', ctx, params["wo"]) + params["bo"]

    def layer_norm(t, g, b):
        mu = t.mean(-1, keepdims=True)
        var = ((t - mu) ** 2).mean(-1, keepdims=True)
        return (t - mu) * jax.lax.rsqrt(var + 1e-5) * g + b

    x1 = layer_norm(x + attn, params["g1"], params["beta1"])
    y = jnp.maximum(jnp.einsum('bld,fd->blf', x1, params["w1"]) + params["bc1"], 0.0)
    y = jnp.einsum('blf,df->bld', y, params["w2"]) + params["bc2"]
    return layer_norm(x1 + y, params["g2"], params["beta2"])


if __name__ == "__main__":
    B, L, d_model, n_heads = 4, 8, 32, 4
    d_ff = 4 * d_model

    root = jax.random.PRNGKey(0)
    kx, kp = jax.random.split(root)
    x = jax.random.normal(kx, (B, L, d_model), jnp.float32)
    params = make_params(kp, d_model, d_ff)

    out = encoder_layer(x, params, n_heads)
    jax.block_until_ready(out)
    assert out.shape == (B, L, d_model)
    assert bool(jnp.all(jnp.isfinite(out)))

    ref = encoder_layer_reference(x, params, n_heads)
    max_err = float(jnp.max(jnp.abs(out - ref)))
    assert max_err < 5e-2, f"mismatch vs reference: max abs err {max_err}"
    print("KERNEL_OK")
</pallas_src>

<mosaic_0001>
module attributes {stable_mosaic.version = 11 : i64} {
  func.func @_encoder_layer_kernel(%arg0: i32, %arg1: memref<2x8x32xbf16, #tpu.memory_space<vmem>>, %arg2: memref<32x96xbf16, #tpu.memory_space<vmem>>, %arg3: memref<1x96xf32, #tpu.memory_space<vmem>>, %arg4: memref<32x32xbf16, #tpu.memory_space<vmem>>, %arg5: memref<1x32xf32, #tpu.memory_space<vmem>>, %arg6: memref<1x32xf32, #tpu.memory_space<vmem>>, %arg7: memref<1x32xf32, #tpu.memory_space<vmem>>, %arg8: memref<32x128xbf16, #tpu.memory_space<vmem>>, %arg9: memref<1x128xf32, #tpu.memory_space<vmem>>, %arg10: memref<128x32xbf16, #tpu.memory_space<vmem>>, %arg11: memref<1x32xf32, #tpu.memory_space<vmem>>, %arg12: memref<1x32xf32, #tpu.memory_space<vmem>>, %arg13: memref<1x32xf32, #tpu.memory_space<vmem>>, %arg14: memref<2x8x32xf32, #tpu.memory_space<vmem>>) attributes {dimension_semantics = [#tpu.dimension_semantics<parallel>], iteration_bounds = array<i64: 2>, scalar_prefetch = 0 : i64, scratch_operands = 0 : i64, tpu.core_type = #tpu.core_type<tc>, window_params = [{transform_indices = @transform_0, window_bounds = array<i64: 2, 8, 32>}, {pipeline_mode = #tpu.pipeline_mode<synchronous>, transform_indices = @transform_1, window_bounds = array<i64: 32, 96>}, {pipeline_mode = #tpu.pipeline_mode<synchronous>, transform_indices = @transform_2, window_bounds = array<i64: 1, 96>}, {pipeline_mode = #tpu.pipeline_mode<synchronous>, transform_indices = @transform_3, window_bounds = array<i64: 32, 32>}, {pipeline_mode = #tpu.pipeline_mode<synchronous>, transform_indices = @transform_4, window_bounds = array<i64: 1, 32>}, {pipeline_mode = #tpu.pipeline_mode<synchronous>, transform_indices = @transform_5, window_bounds = array<i64: 1, 32>}, {pipeline_mode = #tpu.pipeline_mode<synchronous>, transform_indices = @transform_6, window_bounds = array<i64: 1, 32>}, {pipeline_mode = #tpu.pipeline_mode<synchronous>, transform_indices = @transform_7, window_bounds = array<i64: 32, 128>}, {pipeline_mode = #tpu.pipeline_mode<synchronous>, transform_indices = @transform_8, window_bounds = array<i64: 1, 128>}, {pipeline_mode = #tpu.pipeline_mode<synchronous>, transform_indices = @transform_9, window_bounds = array<i64: 128, 32>}, {pipeline_mode = #tpu.pipeline_mode<synchronous>, transform_indices = @transform_10, window_bounds = array<i64: 1, 32>}, {pipeline_mode = #tpu.pipeline_mode<synchronous>, transform_indices = @transform_11, window_bounds = array<i64: 1, 32>}, {pipeline_mode = #tpu.pipeline_mode<synchronous>, transform_indices = @transform_12, window_bounds = array<i64: 1, 32>}, {transform_indices = @transform_13, window_bounds = array<i64: 2, 8, 32>}]} {
    %c0 = arith.constant 0 : index
    %c0_0 = arith.constant 0 : index
    %c0_1 = arith.constant 0 : index
    %0 = vector.load %arg1[%c0, %c0_0, %c0_1] : memref<2x8x32xbf16, #tpu.memory_space<vmem>>, vector<2x8x32xbf16>
    %1 = vector.shape_cast %0 : vector<2x8x32xbf16> to vector<16x32xbf16>
    %2 = arith.extf %1 : vector<16x32xbf16> to vector<16x32xf32>
    %c0_2 = arith.constant 0 : index
    %c0_3 = arith.constant 0 : index
    %3 = vector.load %arg2[%c0_2, %c0_3] : memref<32x96xbf16, #tpu.memory_space<vmem>>, vector<32x96xbf16>
    %cst = arith.constant dense<0.000000e+00> : vector<16x96xf32>
    %4 = tpu.matmul %1, %3, %cst {dimension_numbers = #tpu.dot_dimension_numbers<[1], [0], [0], [1], [0, 0, 1, 1], [], []>} : vector<16x32xbf16>, vector<32x96xbf16>, vector<16x96xf32> -> vector<16x96xf32>
    %c0_4 = arith.constant 0 : index
    %c0_5 = arith.constant 0 : index
    %5 = vector.load %arg3[%c0_4, %c0_5] : memref<1x96xf32, #tpu.memory_space<vmem>>, vector<1x96xf32>
    %6 = vector.broadcast %5 : vector<1x96xf32> to vector<16x96xf32>
    %7 = arith.addf %4, %6 : vector<16x96xf32>
    %8 = vector.extract_strided_slice %7 {offsets = [0, 0], sizes = [16, 32], strides = [1, 1]} : vector<16x96xf32> to vector<16x32xf32>
    %9 = vector.shape_cast %8 : vector<16x32xf32> to vector<2x8x4x8xf32>
    %10 = tpu.transpose %9, [0, 2, 1, 3] : vector<2x8x4x8xf32> -> vector<2x4x8x8xf32>
    %11 = vector.shape_cast %10 : vector<2x4x8x8xf32> to vector<8x8x8xf32>
    %12 = arith.truncf %11 : vector<8x8x8xf32> to vector<8x8x8xbf16>
    %13 = vector.extract_strided_slice %7 {offsets = [0, 32], sizes = [16, 32], strides = [1, 1]} : vector<16x96xf32> to vector<16x32xf32>
    %14 = vector.shape_cast %13 : vector<16x32xf32> to vector<2x8x4x8xf32>
    %15 = tpu.transpose %14, [0, 2, 1, 3] : vector<2x8x4x8xf32> -> vector<2x4x8x8xf32>
    %16 = vector.shape_cast %15 : vector<2x4x8x8xf32> to vector<8x8x8xf32>
    %17 = arith.truncf %16 : vector<8x8x8xf32> to vector<8x8x8xbf16>
    %18 = vector.extract_strided_slice %7 {offsets = [0, 64], sizes = [16, 32], strides = [1, 1]} : vector<16x96xf32> to vector<16x32xf32>
    %19 = vector.shape_cast %18 : vector<16x32xf32> to vector<2x8x4x8xf32>
    %20 = tpu.transpose %19, [0, 2, 1, 3] : vector<2x8x4x8xf32> -> vector<2x4x8x8xf32>
    %21 = vector.shape_cast %20 : vector<2x4x8x8xf32> to vector<8x8x8xf32>
    %22 = arith.truncf %21 : vector<8x8x8xf32> to vector<8x8x8xbf16>
    "tpu.trace_start"() <{level = 10 : i32, message = "bqd,bkd->bqk"}> : () -> ()
    %cst_6 = arith.constant dense<0.000000e+00> : vector<8x8x8xf32>
    %23 = tpu.matmul %12, %17, %cst_6 {dimension_numbers = #tpu.dot_dimension_numbers<[2], [2], [1], [1], [0, 0, 0, 1, 1, 1], [0], [0]>} : vector<8x8x8xbf16>, vector<8x8x8xbf16>, vector<8x8x8xf32> -> vector<8x8x8xf32>
    "tpu.trace_stop"() : () -> ()
    %cst_7 = arith.constant dense<0xFF800000> : vector<8x8xf32>
    %24 = vector.multi_reduction <maximumf>, %23, %cst_7 [2] : vector<8x8x8xf32> to vector<8x8xf32>
    %25 = vector.shape_cast %24 : vector<8x8xf32> to vector<8x8x1xf32>
    %26 = vector.broadcast %25 : vector<8x8x1xf32> to vector<8x8x8xf32>
    %27 = arith.subf %23, %26 : vector<8x8x8xf32>
    %28 = math.exp %27 : vector<8x8x8xf32>
    %cst_8 = arith.constant dense<0.000000e+00> : vector<8x8xf32>
    %29 = vector.multi_reduction <add>, %28, %cst_8 [2] : vector<8x8x8xf32> to vector<8x8xf32>
    %30 = vector.shape_cast %29 : vector<8x8xf32> to vector<8x8x1xf32>
    %31 = arith.truncf %28 : vector<8x8x8xf32> to vector<8x8x8xbf16>
    "tpu.trace_start"() <{level = 10 : i32, message = "bqk,bkd->bqd"}> : () -> ()
    %cst_9 = arith.constant dense<0.000000e+00> : vector<8x8x8xf32>
    %32 = tpu.matmul %31, %22, %cst_9 {dimension_numbers = #tpu.dot_dimension_numbers<[2], [1], [1], [2], [0, 0, 0, 1, 1, 2], [0], [0]>} : vector<8x8x8xbf16>, vector<8x8x8xbf16>, vector<8x8x8xf32> -> vector<8x8x8xf32>
    "tpu.trace_stop"() : () -> ()
    %33 = tpu.reciprocal %30 {approx = true} : vector<8x8x1xf32> -> vector<8x8x1xf32>
    %34 = vector.broadcast %33 : vector<8x8x1xf32> to vector<8x8x8xf32>
    %35 = arith.mulf %32, %34 : vector<8x8x8xf32>
    %36 = vector.shape_cast %35 : vector<8x8x8xf32> to vector<2x4x8x8xf32>
    %37 = tpu.transpose %36, [0, 2, 1, 3] : vector<2x4x8x8xf32> -> vector<2x8x4x8xf32>
    %38 = vector.shape_cast %37 : vector<2x8x4x8xf32> to vector<16x32xf32>
    %39 = arith.truncf %38 : vector<16x32xf32> to vector<16x32xbf16>
    %c0_10 = arith.constant 0 : index
    %c0_11 = arith.constant 0 : index
    %40 = vector.load %arg4[%c0_10, %c0_11] : memref<32x32xbf16, #tpu.memory_space<vmem>>, vector<32x32xbf16>
    %cst_12 = arith.constant dense<0.000000e+00> : vector<16x32xf32>
    %41 = tpu.matmul %39, %40, %cst_12 {dimension_numbers = #tpu.dot_dimension_numbers<[1], [0], [0], [1], [0, 0, 1, 1], [], []>} : vector<16x32xbf16>, vector<32x32xbf16>, vector<16x32xf32> -> vector<16x32xf32>
    %c0_13 = arith.constant 0 : index
    %c0_14 = arith.constant 0 : index
    %42 = vector.load %arg5[%c0_13, %c0_14] : memref<1x32xf32, #tpu.memory_space<vmem>>, vector<1x32xf32>
    %43 = vector.broadcast %42 : vector<1x32xf32> to vector<16x32xf32>
    %44 = arith.addf %41, %43 : vector<16x32xf32>
    %45 = arith.addf %2, %44 : vector<16x32xf32>
    %cst_15 = arith.constant dense<0.000000e+00> : vector<16xf32>
    %46 = vector.multi_reduction <add>, %45, %cst_15 [1] : vector<16x32xf32> to vector<16xf32>
    %47 = vector.shape_cast %46 : vector<16xf32> to vector<16x1xf32>
    %cst_16 = arith.constant 3.200000e+01 : f32
    %48 = vector.broadcast %cst_16 : f32 to vector<16x1xf32>
    %49 = arith.divf %47, %48 : vector<16x1xf32>
    %50 = vector.broadcast %49 : vector<16x1xf32> to vector<16x32xf32>
    %51 = arith.subf %45, %50 : vector<16x32xf32>
    %52 = arith.mulf %51, %51 : vector<16x32xf32>
    %cst_17 = arith.constant dense<0.000000e+00> : vector<16xf32>
    %53 = vector.multi_reduction <add>, %52, %cst_17 [1] : vector<16x32xf32> to vector<16xf32>
    %54 = vector.shape_cast %53 : vector<16xf32> to vector<16x1xf32>
    %cst_18 = arith.constant 3.200000e+01 : f32
    %55 = vector.broadcast %cst_18 : f32 to vector<16x1xf32>
    %56 = arith.divf %54, %55 : vector<16x1xf32>
    %57 = vector.broadcast %49 : vector<16x1xf32> to vector<16x32xf32>
    %58 = arith.subf %45, %57 : vector<16x32xf32>
    %cst_19 = arith.constant 9.99999974E-6 : f32
    %59 = vector.broadcast %cst_19 : f32 to vector<16x1xf32>
    %60 = arith.addf %56, %59 : vector<16x1xf32>
    %61 = math.rsqrt %60 : vector<16x1xf32>
    %62 = vector.broadcast %61 : vector<16x1xf32> to vector<16x32xf32>
    %63 = arith.mulf %58, %62 : vector<16x32xf32>
    %c0_20 = arith.constant 0 : index
    %c0_21 = arith.constant 0 : index
    %64 = vector.load %arg6[%c0_20, %c0_21] : memref<1x32xf32, #tpu.memory_space<vmem>>, vector<1x32xf32>
    %65 = vector.broadcast %64 : vector<1x32xf32> to vector<16x32xf32>
    %66 = arith.mulf %63, %65 : vector<16x32xf32>
    %c0_22 = arith.constant 0 : index
    %c0_23 = arith.constant 0 : index
    %67 = vector.load %arg7[%c0_22, %c0_23] : memref<1x32xf32, #tpu.memory_space<vmem>>, vector<1x32xf32>
    %68 = vector.broadcast %67 : vector<1x32xf32> to vector<16x32xf32>
    %69 = arith.addf %66, %68 : vector<16x32xf32>
    %70 = arith.truncf %69 : vector<16x32xf32> to vector<16x32xbf16>
    %c0_24 = arith.constant 0 : index
    %c0_25 = arith.constant 0 : index
    %71 = vector.load %arg8[%c0_24, %c0_25] : memref<32x128xbf16, #tpu.memory_space<vmem>>, vector<32x128xbf16>
    %cst_26 = arith.constant dense<0.000000e+00> : vector<16x128xf32>
    %72 = tpu.matmul %70, %71, %cst_26 {dimension_numbers = #tpu.dot_dimension_numbers<[1], [0], [0], [1], [0, 0, 1, 1], [], []>} : vector<16x32xbf16>, vector<32x128xbf16>, vector<16x128xf32> -> vector<16x128xf32>
    %c0_27 = arith.constant 0 : index
    %c0_28 = arith.constant 0 : index
    %73 = vector.load %arg9[%c0_27, %c0_28] : memref<1x128xf32, #tpu.memory_space<vmem>>, vector<1x128xf32>
    %74 = vector.broadcast %73 : vector<1x128xf32> to vector<16x128xf32>
    %75 = arith.addf %72, %74 : vector<16x128xf32>
    %cst_29 = arith.constant 0.000000e+00 : f32
    %76 = vector.broadcast %cst_29 : f32 to vector<16x128xf32>
    %77 = arith.maximumf %75, %76 : vector<16x128xf32>
    %78 = arith.truncf %77 : vector<16x128xf32> to vector<16x128xbf16>
    %c0_30 = arith.constant 0 : index
    %c0_31 = arith.constant 0 : index
    %79 = vector.load %arg10[%c0_30, %c0_31] : memref<128x32xbf16, #tpu.memory_space<vmem>>, vector<128x32xbf16>
    %cst_32 = arith.constant dense<0.000000e+00> : vector<16x32xf32>
    %80 = tpu.matmul %78, %79, %cst_32 {dimension_numbers = #tpu.dot_dimension_numbers<[1], [0], [0], [1], [0, 0, 1, 1], [], []>} : vector<16x128xbf16>, vector<128x32xbf16>, vector<16x32xf32> -> vector<16x32xf32>
    %c0_33 = arith.constant 0 : index
    %c0_34 = arith.constant 0 : index
    %81 = vector.load %arg11[%c0_33, %c0_34] : memref<1x32xf32, #tpu.memory_space<vmem>>, vector<1x32xf32>
    %82 = vector.broadcast %81 : vector<1x32xf32> to vector<16x32xf32>
    %83 = arith.addf %80, %82 : vector<16x32xf32>
    %84 = arith.addf %69, %83 : vector<16x32xf32>
    %cst_35 = arith.constant dense<0.000000e+00> : vector<16xf32>
    %85 = vector.multi_reduction <add>, %84, %cst_35 [1] : vector<16x32xf32> to vector<16xf32>
    %86 = vector.shape_cast %85 : vector<16xf32> to vector<16x1xf32>
    %cst_36 = arith.constant 3.200000e+01 : f32
    %87 = vector.broadcast %cst_36 : f32 to vector<16x1xf32>
    %88 = arith.divf %86, %87 : vector<16x1xf32>
    %89 = vector.broadcast %88 : vector<16x1xf32> to vector<16x32xf32>
    %90 = arith.subf %84, %89 : vector<16x32xf32>
    %91 = arith.mulf %90, %90 : vector<16x32xf32>
    %cst_37 = arith.constant dense<0.000000e+00> : vector<16xf32>
    %92 = vector.multi_reduction <add>, %91, %cst_37 [1] : vector<16x32xf32> to vector<16xf32>
    %93 = vector.shape_cast %92 : vector<16xf32> to vector<16x1xf32>
    %cst_38 = arith.constant 3.200000e+01 : f32
    %94 = vector.broadcast %cst_38 : f32 to vector<16x1xf32>
    %95 = arith.divf %93, %94 : vector<16x1xf32>
    %96 = vector.broadcast %88 : vector<16x1xf32> to vector<16x32xf32>
    %97 = arith.subf %84, %96 : vector<16x32xf32>
    %cst_39 = arith.constant 9.99999974E-6 : f32
    %98 = vector.broadcast %cst_39 : f32 to vector<16x1xf32>
    %99 = arith.addf %95, %98 : vector<16x1xf32>
    %100 = math.rsqrt %99 : vector<16x1xf32>
    %101 = vector.broadcast %100 : vector<16x1xf32> to vector<16x32xf32>
    %102 = arith.mulf %97, %101 : vector<16x32xf32>
    %c0_40 = arith.constant 0 : index
    %c0_41 = arith.constant 0 : index
    %103 = vector.load %arg12[%c0_40, %c0_41] : memref<1x32xf32, #tpu.memory_space<vmem>>, vector<1x32xf32>
    %104 = vector.broadcast %103 : vector<1x32xf32> to vector<16x32xf32>
    %105 = arith.mulf %102, %104 : vector<16x32xf32>
    %c0_42 = arith.constant 0 : index
    %c0_43 = arith.constant 0 : index
    %106 = vector.load %arg13[%c0_42, %c0_43] : memref<1x32xf32, #tpu.memory_space<vmem>>, vector<1x32xf32>
    %107 = vector.broadcast %106 : vector<1x32xf32> to vector<16x32xf32>
    %108 = arith.addf %105, %107 : vector<16x32xf32>
    %109 = vector.shape_cast %108 : vector<16x32xf32> to vector<2x8x32xf32>
    %c0_44 = arith.constant 0 : index
    %c0_45 = arith.constant 0 : index
    %c0_46 = arith.constant 0 : index
    %110 = vector.load %arg14[%c0_44, %c0_45, %c0_46] : memref<2x8x32xf32, #tpu.memory_space<vmem>>, vector<2x8x32xf32>
    tpu.vector_store %arg14[%c0_44, %c0_45, %c0_46], %109 {strides = array<i32>} : memref<2x8x32xf32, #tpu.memory_space<vmem>>, vector<2x8x32xf32>,
    return
  }
  func.func @transform_0(%arg0: i32) -> (i32, i32, i32) {
    %c0_i32 = arith.constant 0 : i32
    %c0_i32_0 = arith.constant 0 : i32
    %c0_i32_1 = arith.constant 0 : i32
    return %arg0, %c0_i32, %c0_i32_0 : i32, i32, i32
  }
  func.func @transform_1(%arg0: i32) -> (i32, i32) {
    %c0_i32 = arith.constant 0 : i32
    %c0_i32_0 = arith.constant 0 : i32
    %c0_i32_1 = arith.constant 0 : i32
    return %c0_i32, %c0_i32_0 : i32, i32
  }
  func.func @transform_2(%arg0: i32) -> (i32, i32) {
    %c0_i32 = arith.constant 0 : i32
    %c0_i32_0 = arith.constant 0 : i32
    %c0_i32_1 = arith.constant 0 : i32
    return %c0_i32, %c0_i32_0 : i32, i32
  }
  func.func @transform_3(%arg0: i32) -> (i32, i32) {
    %c0_i32 = arith.constant 0 : i32
    %c0_i32_0 = arith.constant 0 : i32
    %c0_i32_1 = arith.constant 0 : i32
    return %c0_i32, %c0_i32_0 : i32, i32
  }
  func.func @transform_4(%arg0: i32) -> (i32, i32) {
    %c0_i32 = arith.constant 0 : i32
    %c0_i32_0 = arith.constant 0 : i32
    %c0_i32_1 = arith.constant 0 : i32
    return %c0_i32, %c0_i32_0 : i32, i32
  }
  func.func @transform_5(%arg0: i32) -> (i32, i32) {
    %c0_i32 = arith.constant 0 : i32
    %c0_i32_0 = arith.constant 0 : i32
    %c0_i32_1 = arith.constant 0 : i32
    return %c0_i32, %c0_i32_0 : i32, i32
  }
  func.func @transform_6(%arg0: i32) -> (i32, i32) {
    %c0_i32 = arith.constant 0 : i32
    %c0_i32_0 = arith.constant 0 : i32
    %c0_i32_1 = arith.constant 0 : i32
    return %c0_i32, %c0_i32_0 : i32, i32
  }
  func.func @transform_7(%arg0: i32) -> (i32, i32) {
    %c0_i32 = arith.constant 0 : i32
    %c0_i32_0 = arith.constant 0 : i32
    %c0_i32_1 = arith.constant 0 : i32
    return %c0_i32, %c0_i32_0 : i32, i32
  }
  func.func @transform_8(%arg0: i32) -> (i32, i32) {
    %c0_i32 = arith.constant 0 : i32
    %c0_i32_0 = arith.constant 0 : i32
    %c0_i32_1 = arith.constant 0 : i32
    return %c0_i32, %c0_i32_0 : i32, i32
  }
  func.func @transform_9(%arg0: i32) -> (i32, i32) {
    %c0_i32 = arith.constant 0 : i32
    %c0_i32_0 = arith.constant 0 : i32
    %c0_i32_1 = arith.constant 0 : i32
    return %c0_i32, %c0_i32_0 : i32, i32
  }
  func.func @transform_10(%arg0: i32) -> (i32, i32) {
    %c0_i32 = arith.constant 0 : i32
    %c0_i32_0 = arith.constant 0 : i32
    %c0_i32_1 = arith.constant 0 : i32
    return %c0_i32, %c0_i32_0 : i32, i32
  }
  func.func @transform_11(%arg0: i32) -> (i32, i32) {
    %c0_i32 = arith.constant 0 : i32
    %c0_i32_0 = arith.constant 0 : i32
    %c0_i32_1 = arith.constant 0 : i32
    return %c0_i32, %c0_i32_0 : i32, i32
  }
  func.func @transform_12(%arg0: i32) -> (i32, i32) {
    %c0_i32 = arith.constant 0 : i32
    %c0_i32_0 = arith.constant 0 : i32
    %c0_i32_1 = arith.constant 0 : i32
    return %c0_i32, %c0_i32_0 : i32, i32
  }
  func.func @transform_13(%arg0: i32) -> (i32, i32, i32) {
    %c0_i32 = arith.constant 0 : i32
    %c0_i32_0 = arith.constant 0 : i32
    %c0_i32_1 = arith.constant 0 : i32
    return %arg0, %c0_i32, %c0_i32_0 : i32, i32, i32
  }
}

</mosaic_0001>

<bundles_post_ra>
// kernel: tpu_custom_call.1
= control target key start
LH: loop header
LB: loop body
LE: loop exit
PB: predicated region body
PF: predicated region fallthrough
CT: control target
= control target key end

     0   :  { %s4121_s0 = inlined_call_operand.vmem [shape: bf16[4,8,32], index: 0, kind: input, shape index: {}]   ;;  %s4122_s1 = inlined_call_operand.vmem [shape: bf16[32,96], index: 1, kind: input, shape index: {}]   ;;  %s4123_s2 = inlined_call_operand.vmem [shape: f32[1,96], index: 2, kind: input, shape index: {}]   ;;  %s4124_s3 = inlined_call_operand.vmem [shape: bf16[32,32], index: 3, kind: input, shape index: {}]   ;;  %s4125_s4 = inlined_call_operand.vmem [shape: f32[1,32], index: 4, kind: input, shape index: {}]   ;;  %s4126_s5 = inlined_call_operand.vmem [shape: f32[1,32], index: 5, kind: input, shape index: {}]   ;;  %s4127_s6 = inlined_call_operand.vmem [shape: f32[1,32], index: 6, kind: input, shape index: {}]   ;;  %s4128_s7 = inlined_call_operand.vmem [shape: bf16[32,128], index: 7, kind: input, shape index: {}]   ;;  %s4129_s8 = inlined_call_operand.vmem [shape: f32[1,128], index: 8, kind: input, shape index: {}]   ;;  %s4130_s9 = inlined_call_operand.vmem [shape: bf16[128,32], index: 9, kind: input, shape index: {}]   ;;  %s4131_s10 = inlined_call_operand.vmem [shape: f32[1,32], index: 10, kind: input, shape index: {}]   ;;  %s4132_s11 = inlined_call_operand.vmem [shape: f32[1,32], index: 11, kind: input, shape index: {}]   ;;  %s4133_s12 = inlined_call_operand.vmem [shape: f32[1,32], index: 12, kind: input, shape index: {}]   ;;  %s4134_s13 = inlined_call_operand.hbm [shape: f32[4,8,32], index: 13, kind: output, shape index: {}]  }
   0x1   :  { %4136 = sst [smem:[#allocation5_spill]] %s4121_s0 }
   0x2   :  { %4137 = sst [smem:[#allocation6_spill]] %s4122_s1 }
   0x3   :  { %4138 = sst [smem:[#allocation7_spill]] %s4123_s2 }
   0x4   :  { %4139 = sst [smem:[#allocation8_spill]] %s4124_s3 }
   0x5   :  { %18 = vsyncpa [#allocation3], 0 }
   0x6   :  { %20 = vsyncpa [#allocation3 + $0x1], 0  ;;  %s3521_s25 = smov 0   ;;  %s3523_s26 = smov 0  }
   0x7   :  { %s3525_s27 = smov 0   ;;  %s3527_s28 = smov 0  }
   0x8 LB: > { %s3542_s29 = sadd.s32 4294967295, %s3435_s28   ;;  %s2988_s30 = sadd.s32 4294967294, %s3435_s28   ;;  %s3435_s28 = sphi %s3527_s28, %s4150_s28   ;;  %s3431_s27 = sphi %s3525_s27, %s4149_s27   ;;  %s3427_s26 = sphi %s3523_s26, %s4148_s26   ;;  %s3423_s25 = sphi %s3521_s25, %s4147_s25  }
   0x9   : > { %s3546_s14 = sadd.s32 1, %s3435_s28   ;;  %s311_s15 = sadd.s32 1, %s3431_s27 }
   0xa   : > { %s308_s16 = ssub.s32 %s3435_s28, %s3546_s14  ;;  %p321_p0 = scmp.ne.s32.totalorder %s3431_s27, %s3427_s26 }
   0xb   : > { %p309_p1 = scmp.eq.s32.totalorder %s308_s16, 0  ;;  %p322_p2 = scmp.eq.s32.totalorder %s3542_s29, 1 }
   0xc   : > { %p327_p3 = scmp.ne.s32.totalorder %s3427_s26, %s3423_s25  ;;  %p328_p4 = scmp.eq.s32.totalorder %s2988_s30, 1 }
   0xd   : > { %s3557_s17 = scalar_select %p309_p1, %s3431_s27, %s311_s15  }
   0xe   : > { %p3559_p5 = por %p322_p2, %p321_p0  ;;  %p3563_p6 = por %p328_p4, %p327_p3 }
   0xf   : > { %p2991_p7 = scmp.ge.s32.totalorder %s3435_s28, 1  ;;  %p391_p8 = scmp.lt.s32.totalorder %s3435_s28, 3 }
  0x11   : > { %p392_p9 = pnand %p2991_p7, %p391_p8 }
  0x12   : > { %s4142_s1 = sld [smem:[#allocation6_spill]] (!%p392_p9)  ;;  %v3437_v1 = vmov (!%p392_p9), 0.0   ;;  %vm3438_vm0 = vmmov (!%p392_p9), 0   ;;  %s2993_s24 = sshll.u32 (!%p392_p9), %s3542_s29, 1  ;;  %vm475_vm1 = vcmask (!%p392_p9), 261120   ;;  %v545_v13 = vlaneseq (!%p392_p9) }
  0x13   : > { %395 = sbr.rel (%p392_p9) target bundleno = 2617 (0xa39), region = 72  ;;  %3109 = vmatprep.subr.bf16.mxu0 (!%p392_p9), %v3437_v1  ;;  %3129 = vmatprep.subr.bf16.mxu1 (!%p392_p9), %v3437_v1  ;;  %p436_p10 = scmp.lt.s32.totalorder (!%p392_p9), %s2993_s24, 3  ;;  %v3443_v11 = vmov (!%p392_p9), 1983009808   ;;  %v3444_v14 = vmov (!%p392_p9), 1934713408  }
  0x14   : > { %3113 = vmatprep.mubr.msk.bf16.mxu0 (!%p392_p9), %vm3438_vm0, %v3437_v1  ;;  %3131 = vmatprep.mubr.msk.bf16.mxu1 (!%p392_p9), %vm3438_vm0, %v3437_v1  ;;  %s4143_s0 = sld [smem:[#allocation5_spill]] (!%p392_p9)  ;;  %s4144_s2 = sld [smem:[#allocation7_spill]] (!%p392_p9)  ;;  %v543_v12 = vunpack.c.l.s4 (!%p392_p9), %v3443_v11  ;;  %v575_v15 = vunpack.c.l.s4 (!%p392_p9), %v3444_v14  ;;  %v546_v17 = vshrl.u32 (!%p392_p9), %v545_v13, 7  ;;  %vm1428_vm2 = vcmask (!%p392_p9), 64512  }
  0x15   : > { %s3439_s23 = smov (!%p392_p9), 104   ;;  %s3442_s15 = smov (!%p392_p9), 96   ;;  %vm1880_vm3 = vcmask (!%p392_p9), 1043456   ;;  %vm2560_vm4 = vcmask (!%p392_p9), 130048   ;;  %vm2563_vm5 = vcmask (!%p392_p9), 195584  }
  0x16   : > { %v544_v16 = vunpack.c.0.s8 (!%p392_p9), %v543_v12  ;;  %v576_v22 = vunpack.c.0.s8 (!%p392_p9), %v575_v15  ;;  %s3445_s16 = smov (!%p392_p9), 64   ;;  %s4145_s3 = sld [smem:[#allocation8_spill]] (!%p392_p9) }
  0x18   : > { %v3316_v0 = vld [vmem:[%s4142_s1] sm:$0xff] (!%p392_p9)   ;;  %v3317_v2 = vld [vmem:[%s4142_s1 + $0x8] sm:$0xff] (!%p392_p9)   ;;  %v3609_v23 = vsub.s32 (!%p392_p9), %v544_v16, %v546_v17  ;;  %v3615_v27 = vsub.s32 (!%p392_p9), %v576_v22, %v546_v17  ;;  %s3449_s1 = smov (!%p392_p9), [#allocation2]  }
  0x19   : > { %3110 = vmatpush3.bf16.msra.mxu0 (!%p392_p9), %v3316_v0 }
  0x1a   : > { %3111 = vmatprep.subr.bf16.mxu0 %v3437_v1  ;;  %s4152_s24 = smov (!%p436_p10, %s2993_s24), 3  ;;  %v2995_v4 = vld [vmem:[%s4144_s2] ss:$0 sm:$0xff]  ;;  %s3377_s2 = sshll.u32 %s3449_s1, 4  ;;  %s3378_s2 = int_to_ptr.vmem [resolvable:$false] %s3377_s2 }
  0x1b   : > { %s2994_s30 = sshll.u32 %s4152_s24, 2  ;;  %s3440_s24 = smov 120  }
  0x1c   : > { %s3587_s20 = scalar_lea.vmem %s4143_s0, %s2994_s30  ;;  %s3441_s30 = smov 112  }
  0x1d   : > { %3112 = vmatpush3.bf16.msra.mxu0 %v3317_v2  ;;  %v443_v3 = vld [vmem:[%s3587_s20] sm:$0xff]   ;;  %s3379_s21 = scalar_lea.vmem %s3378_s2, 512 }
  0x1e   : > { %3117 = vmatprep.subr.bf16.mxu0 %v3437_v1 }
  0x20   : > { %3114 = vmatmul.mubr.msk.bf16.vlgmr.msra.gmra.mrb[0].mxu0 %vm475_vm1, %v443_v3 }
  0x21   : > { %3119 = vmatprep.mubr.msk.bf16.mxu0 %vm3438_vm0, %v3437_v1 }
  0xf3   : > { %v513_v5 = vpop.f32.mrb[0].mxu0 }
  0xf4   : > { %v3596_v6 = vadd.f32 %v2995_v4, %v513_v5  ;;  %v3115_v7 = vpop.f32.mrb[1].mxu0 }
  0xf5   : > { %v516_v8 = vpop.f32.mrb[2].mxu0 }
  0xf6   : > { %534 = vrot.lane.b32.xlu1 %v3596_v6, %s3439_s23  ;;  %522 = vrot.lane.b32.xlu0 %v3596_v6, %s3440_s24  ;;  %v3116_v9 = vpop.f32.mrb[3].mxu0  ;;  %v3600_v10 = vadd.f32 %v2995_v4, %v516_v8 }
  0xfa   : > { %528 = vrot.lane.b32.xlu0 %v3596_v6, %s3441_s30  ;;  %524 = vrot.lane.b32.xlu1 %v3600_v10, %s3440_s24  ;;  %s3058_s24 = sshll.u32 %s3542_s29, 8 }
  0xfe   : > { %530 = vrot.lane.b32.xlu0 %v3600_v10, %s3441_s30  ;;  %536 = vrot.lane.b32.xlu1 %v3600_v10, %s3439_s23  ;;  %s3446_s30 = smov 16  }
 0x102   : > { %820 = vrot.lane.b32.xlu0 %v3596_v6, %s3442_s15 }
 0x168   : > { %v535_v18 = vpop.permute.xlu1 %534  ;;  %v523_v19 = vpop.permute.xlu0 %522 }
 0x169   : > { %v556_v20 = vcombine.low %v523_v19, %v535_v18  ;;  %v557_v21 = vcombine.high %v523_v19, %v535_v18  ;;  %824 = vrot.lane.b32.xlu1 %v523_v19, %s3442_s15 }
 0x16b   : > { %v564_v28 = vrot.slane %v556_v20, %v3609_v23  ;;  %v571_v29 = vrot.slane %v557_v21, %v3609_v23 }
 0x16c   : > { %v529_v24 = vpop.permute.xlu0 %528  ;;  %v3621_v32 = vpop.permute.xlu1 %524 }
 0x16d   : > { %v540_v25 = vcombine.low %v3596_v6, %v529_v24  ;;  %v541_v26 = vcombine.high %v3596_v6, %v529_v24  ;;  %828 = vrot.lane.b32.xlu0 %v529_v24, %s3442_s15  ;;  %832 = vrot.lane.b32.xlu1 %v535_v18, %s3442_s15 }
 0x16f   : > { %v548_v30 = vrot.slane %v540_v25, %v3609_v23  ;;  %v555_v31 = vrot.slane %v541_v26, %v3609_v23 }
 0x170   : > { %v3631_v41 = vpop.permute.xlu0 %530  ;;  %v3633_v46 = vpop.permute.xlu1 %536 }
 0x171   : > { %v572_v33 = vcombine.low %v548_v30, %v564_v28  ;;  %v573_v34 = vcombine.high %v548_v30, %v564_v28  ;;  %v588_v35 = vcombine.low %v555_v31, %v571_v29  ;;  %v589_v36 = vcombine.high %v555_v31, %v571_v29  ;;  %822 = vrot.lane.b32.xlu0 %v3600_v10, %s3442_s15 }
 0x172   : > { %826 = vrot.lane.b32.xlu1 %v3621_v32, %s3442_s15  ;;  %v608_v63 = vcombine.low %v3600_v10, %v3631_v41  ;;  %v609_v0 = vcombine.high %v3600_v10, %v3631_v41  ;;  %v624_v2 = vcombine.low %v3621_v32, %v3633_v46  ;;  %v625_v3 = vcombine.high %v3621_v32, %v3633_v46 }
 0x173   : > { %v580_v37 = vrot.slane %v572_v33, %v3615_v27  ;;  %v587_v38 = vrot.slane %v573_v34, %v3615_v27  ;;  %v596_v39 = vrot.slane %v588_v35, %v3615_v27  ;;  %v603_v40 = vrot.slane %v589_v36, %v3615_v27 }
 0x174   : > { %v616_v4 = vrot.slane %v608_v63, %v3609_v23  ;;  %v623_v5 = vrot.slane %v609_v0, %v3609_v23  ;;  %v639_v7 = vrot.slane %v625_v3, %v3609_v23  ;;  %v821_v13 = vpop.permute.xlu0 %820 }
 0x175   : > { %v676_v42 = vcombine.low %v580_v37, %v587_v38  ;;  %v3000_v43 = vcombine.high %v580_v37, %v587_v38  ;;  %v692_v44 = vcombine.low %v596_v39, %v603_v40  ;;  %v3001_v45 = vcombine.high %v596_v39, %v603_v40  ;;  %830 = vrot.lane.b32.xlu0 %v3631_v41, %s3442_s15 }
 0x176   : > { %834 = vrot.lane.b32.xlu1 %v3633_v46, %s3442_s15  ;;  %v656_v11 = vcombine.low %v623_v5, %v639_v7  ;;  %v657_v12 = vcombine.high %v623_v5, %v639_v7  ;;  %s4135_s15 = smov 8  }
 0x177   : > { %v683_v47 = vrot.slane %v676_v42, %v3609_v23  ;;  %v691_v48 = vrot.slane %v3000_v43, %v3609_v23  ;;  %v699_v49 = vrot.slane %v692_v44, %v3609_v23  ;;  %v707_v50 = vrot.slane %v3001_v45, %v3609_v23 }
 0x178   : > { %v3677_v16 = vrot.slane %v656_v11, %v3615_v27  ;;  %v3680_v17 = vrot.slane %v657_v12, %v3615_v27 }
 0x179   : > { %1124 = vrot.lane.b32.xlu0 %v3596_v6, %s3445_s16  ;;  %v708_v51 = vcombine.low %v683_v47, %v691_v48  ;;  %v724_v52 = vcombine.low %v699_v49, %v707_v50  ;;  %v709_v53 = vcombine.high %v683_v47, %v691_v48  ;;  %v725_v57 = vcombine.high %v699_v49, %v707_v50 }
 0x17a   : > { %1128 = vrot.lane.b32.xlu1 %v523_v19, %s3445_s16  ;;  %v632_v6 = vrot.slane %v624_v2, %v3609_v23  ;;  %v760_v33 = vcombine.low %v3677_v16, %v3680_v17  ;;  %v3003_v49 = vcombine.high %v3677_v16, %v3680_v17 }
 0x17b   : > { %v716_v54 = vrot.slane %v708_v51, %v3615_v27  ;;  %v732_v55 = vrot.slane %v724_v52, %v3615_v27  ;;  %v723_v56 = vrot.slane %v709_v53, %v3615_v27  ;;  %v739_v59 = vrot.slane %v725_v57, %v3615_v27 }
 0x17c   : > { %v640_v8 = vcombine.low %v616_v4, %v632_v6  ;;  %v641_v9 = vcombine.high %v616_v4, %v632_v6  ;;  %v3699_v48 = vrot.slane %v760_v33, %v3609_v23 }
 0x17d   : > { %1132 = vrot.lane.b32.xlu0 %v529_v24, %s3445_s16  ;;  %v3650_v58 = vcombine.low %v716_v54, %v732_v55  ;;  %v3653_v60 = vcombine.high %v716_v54, %v732_v55  ;;  %v3656_v61 = vcombine.low %v723_v56, %v739_v59  ;;  %v3658_v62 = vcombine.high %v723_v56, %v739_v59 }
 0x17e   : > { %1136 = vrot.lane.b32.xlu1 %v535_v18, %s3445_s16  ;;  %v648_v14 = vrot.slane %v640_v8, %v3615_v27  ;;  %v655_v15 = vrot.slane %v641_v9, %v3615_v27 }
 0x180   : > { %v744_v30 = vcombine.low %v648_v14, %v655_v15  ;;  %v3002_v31 = vcombine.high %v648_v14, %v655_v15 }
 0x182   : > { %1126 = vrot.lane.b32.xlu1 %v3600_v10, %s3445_s16  ;;  %v3693_v45 = vrot.slane %v744_v30, %v3609_v23  ;;  %v3696_v47 = vrot.slane %v3002_v31, %v3609_v23 }
 0x1db   : > { %v825_v10 = vpop.permute.xlu1 %824 }
 0x1df   : > { %v829_v18 = vpop.permute.xlu0 %828  ;;  %v833_v19 = vpop.permute.xlu1 %832 }
 0x1e0   : > { %v844_v20 = vcombine.low %v821_v13, %v829_v18  ;;  %v845_v21 = vcombine.high %v821_v13, %v829_v18  ;;  %v860_v22 = vcombine.low %v825_v10, %v833_v19  ;;  %v861_v24 = vcombine.high %v825_v10, %v833_v19 }
 0x1e2   : > { %v852_v25 = vrot.slane %v844_v20, %v3609_v23  ;;  %v859_v26 = vrot.slane %v845_v21, %v3609_v23  ;;  %v868_v28 = vrot.slane %v860_v22, %v3609_v23  ;;  %v875_v29 = vrot.slane %v861_v24, %v3609_v23 }
 0x1e3   : > { %v823_v34 = vpop.permute.xlu0 %822 }
 0x1e4   : > { %v876_v35 = vcombine.low %v852_v25, %v868_v28  ;;  %v877_v36 = vcombine.high %v852_v25, %v868_v28  ;;  %v892_v37 = vcombine.low %v859_v26, %v875_v29  ;;  %v893_v38 = vcombine.high %v859_v26, %v875_v29  ;;  %v827_v39 = vpop.permute.xlu1 %826 }
 0x1e6   : > { %v884_v40 = vrot.slane %v876_v35, %v3615_v27  ;;  %v891_v42 = vrot.slane %v877_v36, %v3615_v27  ;;  %v900_v43 = vrot.slane %v892_v37, %v3615_v27  ;;  %v907_v44 = vrot.slane %v893_v38, %v3615_v27 }
 0x1e7   : > { %v831_v50 = vpop.permute.xlu0 %830 }
 0x1e8   : > { %v980_v51 = vcombine.low %v884_v40, %v891_v42  ;;  %v3004_v52 = vcombine.high %v884_v40, %v891_v42  ;;  %v996_v53 = vcombine.low %v900_v43, %v907_v44  ;;  %v3005_v54 = vcombine.high %v900_v43, %v907_v44  ;;  %v835_v55 = vpop.permute.xlu1 %834 }
 0x1e9   : > { %v912_v56 = vcombine.low %v823_v34, %v831_v50  ;;  %v913_v57 = vcombine.high %v823_v34, %v831_v50  ;;  %v928_v59 = vcombine.low %v827_v39, %v835_v55  ;;  %v929_v63 = vcombine.high %v827_v39, %v835_v55 }
 0x1ea   : > { %v987_v0 = vrot.slane %v980_v51, %v3609_v23  ;;  %v995_v2 = vrot.slane %v3004_v52, %v3609_v23  ;;  %v1003_v3 = vrot.slane %v996_v53, %v3609_v23  ;;  %v1011_v4 = vrot.slane %v3005_v54, %v3609_v23 }
 0x1eb   : > { %v920_v5 = vrot.slane %v912_v56, %v3609_v23  ;;  %v927_v6 = vrot.slane %v913_v57, %v3609_v23  ;;  %v936_v7 = vrot.slane %v928_v59, %v3609_v23  ;;  %v943_v8 = vrot.slane %v929_v63, %v3609_v23  ;;  %v1125_v9 = vpop.permute.xlu0 %1124 }
 0x1ec   : > { %v1129_v11 = vpop.permute.xlu1 %1128  ;;  %v1012_v12 = vcombine.low %v987_v0, %v995_v2  ;;  %v1028_v13 = vcombine.low %v1003_v3, %v1011_v4  ;;  %v1013_v10 = vcombine.high %v987_v0, %v995_v2  ;;  %v1029_v14 = vcombine.high %v1003_v3, %v1011_v4 }
 0x1ed   : > { %v944_v15 = vcombine.low %v920_v5, %v936_v7  ;;  %v945_v16 = vcombine.high %v920_v5, %v936_v7  ;;  %v960_v17 = vcombine.low %v927_v6, %v943_v8  ;;  %v961_v18 = vcombine.high %v927_v6, %v943_v8 }
 0x1ee   : > { %v1020_v19 = vrot.slane %v1012_v12, %v3615_v27  ;;  %v1036_v20 = vrot.slane %v1028_v13, %v3615_v27  ;;  %v3714_v21 = vrot.slane %v1013_v10, %v3615_v27  ;;  %v3717_v22 = vrot.slane %v1029_v14, %v3615_v27 }
 0x1ef   : > { %v952_v24 = vrot.slane %v944_v15, %v3615_v27  ;;  %v959_v25 = vrot.slane %v945_v16, %v3615_v27  ;;  %v968_v26 = vrot.slane %v960_v17, %v3615_v27  ;;  %v975_v28 = vrot.slane %v961_v18, %v3615_v27  ;;  %v1133_v29 = vpop.permute.xlu0 %1132 }
 0x1f0   : > { %v1148_v30 = vcombine.low %v1125_v9, %v1133_v29  ;;  %v1149_v31 = vcombine.high %v1125_v9, %v1133_v29  ;;  %v1137_v33 = vpop.permute.xlu1 %1136  ;;  %v1044_v34 = vcombine.low %v1020_v19, %v1036_v20  ;;  %v1046_v35 = vcombine.low %v3714_v21, %v3717_v22 }
 0x1f1   : > { %v1048_v36 = vcombine.low %v952_v24, %v959_v25  ;;  %v3006_v37 = vcombine.high %v952_v24, %v959_v25  ;;  %v1064_v38 = vcombine.low %v968_v26, %v975_v28  ;;  %v3007_v39 = vcombine.high %v968_v26, %v975_v28 }
 0x1f2   : > { %v1156_v40 = vrot.slane %v1148_v30, %v3609_v23  ;;  %v1163_v42 = vrot.slane %v1149_v31, %v3609_v23  ;;  %v1164_v43 = vcombine.low %v1129_v11, %v1137_v33  ;;  %v1165_v44 = vcombine.high %v1129_v11, %v1137_v33 }
 0x1f3   : > { %v1055_v50 = vrot.slane %v1048_v36, %v3609_v23  ;;  %v1063_v51 = vrot.slane %v3006_v37, %v3609_v23  ;;  %v1071_v52 = vrot.slane %v1064_v38, %v3609_v23  ;;  %v1079_v53 = vrot.slane %v3007_v39, %v3609_v23 }
 0x1f4   : > { %v1172_v54 = vrot.slane %v1164_v43, %v3609_v23  ;;  %v1179_v55 = vrot.slane %v1165_v44, %v3609_v23  ;;  %v1116_v56 = vpack.c.bf16 %v1044_v34, %v1044_v34  ;;  %v1118_v57 = vpack.c.bf16 %v1046_v35, %v1046_v35 }
 0x1f5   : > { %v3734_v59 = vrot.slane %v3003_v49, %v3609_v23  ;;  %v1080_v63 = vcombine.low %v1055_v50, %v1063_v51  ;;  %v1096_v0 = vcombine.low %v1071_v52, %v1079_v53  ;;  %v776_v2 = vcombine.low %v3693_v45, %v3696_v47 }
 0x1f6   : > { %v1180_v3 = vcombine.low %v1156_v40, %v1172_v54  ;;  %v1181_v4 = vcombine.high %v1156_v40, %v1172_v54  ;;  %v1196_v5 = vcombine.low %v1163_v42, %v1179_v55  ;;  %v1197_v6 = vcombine.high %v1163_v42, %v1179_v55 }
 0x1f7   : > { %v1433_v7 = vsel %vm1428_vm2, %v1116_v56, 0  ;;  %v1525_v8 = vsel %vm1428_vm2, %v1118_v57, 0  ;;  %v1045_v9 = vcombine.high %v1020_v19, %v1036_v20  ;;  %v3741_v11 = vrot.slane %v1080_v63, %v3615_v27 }
 0x1f8   : > { %v1188_v49 = vrot.slane %v1180_v3, %v3615_v27  ;;  %v1195_v12 = vrot.slane %v1181_v4, %v3615_v27  ;;  %v1204_v13 = vrot.slane %v1196_v5, %v3615_v27  ;;  %v1211_v10 = vrot.slane %v1197_v6, %v3615_v27  ;;  %3118 = vmatpush3.bf16.xpose.msra.mxu0 %v1433_v7 }
 0x1f9   : > { %3130 = vmatpush3.bf16.xpose.msra.mxu1 %v1525_v8  ;;  %3123 = vmatprep.subr.bf16.mxu0 %v3437_v1  ;;  %v1104_v14 = vrot.slane %v1096_v0, %v3615_v27  ;;  %v792_v15 = vcombine.low %v3699_v48, %v3734_v59  ;;  %v1081_v16 = vcombine.high %v1055_v50, %v1063_v51 }
 0x1fa   : > { %v1284_v17 = vcombine.low %v1188_v49, %v1195_v12  ;;  %v3008_v18 = vcombine.high %v1188_v49, %v1195_v12  ;;  %v1300_v19 = vcombine.low %v1204_v13, %v1211_v10  ;;  %v3009_v20 = vcombine.high %v1204_v13, %v1211_v10  ;;  %3141 = vmatprep.subr.bf16.mxu1 %v3437_v1 }
 0x1fb   : > { %v1117_v24 = vpack.c.bf16 %v1045_v9, %v1045_v9  ;;  %v1112_v25 = vcombine.low %v3741_v11, %v1104_v14  ;;  %v3754_v26 = vrot.slane %v1081_v16, %v3615_v27  ;;  %v1097_v28 = vcombine.high %v1071_v52, %v1079_v53 }
 0x1fc   : > { %v1291_v29 = vrot.slane %v1284_v17, %v3609_v23  ;;  %v1299_v30 = vrot.slane %v3008_v18, %v3609_v23  ;;  %v1307_v31 = vrot.slane %v1300_v19, %v3609_v23  ;;  %v1315_v33 = vrot.slane %v3009_v20, %v3609_v23 }
 0x1fd   : > { %v812_v34 = vpack.c.bf16 %v3650_v58, %v3650_v58  ;;  %v1120_v35 = vpack.c.bf16 %v1112_v25, %v1112_v25  ;;  %v784_v36 = vrot.slane %v776_v2, %v3615_v27  ;;  %v1111_v37 = vrot.slane %v1097_v28, %v3615_v27 }
 0x1fe   : > { %v814_v38 = vpack.c.bf16 %v3656_v61, %v3656_v61  ;;  %v800_v39 = vrot.slane %v792_v15, %v3615_v27  ;;  %v1317_v40 = vcombine.high %v1291_v29, %v1299_v30  ;;  %v1333_v42 = vcombine.high %v1307_v31, %v1315_v33 }
 0x1ff   : > { %3120 = vmatmul.mubr.msk.bf16.vlgmr.msra.gmra.mrb[4].mxu0 %vm1428_vm2, %v812_v34  ;;  %v1479_v43 = vsel %vm1428_vm2, %v1117_v24, 0  ;;  %v1617_v44 = vsel %vm1428_vm2, %v1120_v35, 0  ;;  %v1047_v58 = vcombine.high %v3714_v21, %v3717_v22  ;;  %v1316_v50 = vcombine.low %v1291_v29, %v1299_v30 }
 0x200   : > { %3132 = vmatmul.mubr.msk.bf16.vlgmr.msra.gmra.mrb[0].mxu1 %vm1428_vm2, %v814_v38  ;;  %3124 = vmatpush3.bf16.xpose.msra.mxu0 %v1479_v43  ;;  %v1114_v51 = vcombine.low %v3754_v26, %v1111_v37  ;;  %v1332_v61 = vcombine.low %v1307_v31, %v1315_v33  ;;  %v1331_v52 = vrot.slane %v1317_v40, %v3615_v27 }
 0x201   : > { %3142 = vmatpush3.bf16.xpose.msra.mxu1 %v1617_v44  ;;  %3125 = vmatprep.mubr.msk.bf16.mxu0 %vm3438_vm0, %v3437_v1  ;;  %v1347_v53 = vrot.slane %v1333_v42, %v3615_v27  ;;  %v808_v21 = vcombine.low %v784_v36, %v800_v39  ;;  %v777_v22 = vcombine.high %v3693_v45, %v3696_v47 }
 0x202   : > { %3143 = vmatprep.mubr.msk.bf16.mxu1 %vm3438_vm0, %v3437_v1  ;;  %3135 = vmatprep.subr.bf16.mxu0 %v3437_v1  ;;  %v793_v54 = vcombine.high %v3699_v48, %v3734_v59  ;;  %v1119_v55 = vpack.c.bf16 %v1047_v58, %v1047_v58  ;;  %v1122_v63 = vpack.c.bf16 %v1114_v51, %v1114_v51 }
 0x203   : > { %3153 = vmatprep.subr.bf16.mxu1 %v3437_v1  ;;  %v3786_v56 = vcombine.low %v1331_v52, %v1347_v53  ;;  %v3788_v57 = vcombine.high %v1331_v52, %v1347_v53  ;;  %v1324_v0 = vrot.slane %v1316_v50, %v3615_v27  ;;  %v1340_v2 = vrot.slane %v1332_v61, %v3615_v27 }
 0x204   : > { %v813_v3 = vpack.c.bf16 %v3653_v60, %v3653_v60  ;;  %v816_v4 = vpack.c.bf16 %v808_v21, %v808_v21  ;;  %v791_v45 = vrot.slane %v777_v22, %v3615_v27  ;;  %v807_v47 = vrot.slane %v793_v54, %v3615_v27 }
 0x205   : > { %v1571_v48 = vsel %vm1428_vm2, %v1119_v55, 0  ;;  %v1113_v59 = vcombine.high %v3741_v11, %v1104_v14  ;;  %v1709_v5 = vsel %vm1428_vm2, %v1122_v63, 0  ;;  %v1348_v6 = vcombine.low %v1324_v0, %v1340_v2 }
 0x206   : > { %v810_v60 = vcombine.low %v791_v45, %v807_v47  ;;  %v815_v9 = vpack.c.bf16 %v3658_v62, %v3658_v62  ;;  %v1115_v12 = vcombine.high %v3754_v26, %v1111_v37  ;;  %v809_v10 = vcombine.high %v784_v36, %v800_v39 }
 0x207   : > { %3126 = vmatmul.mubr.msk.bf16.vlgmr.msra.gmra.mrb[8].mxu0 %vm1428_vm2, %v813_v3  ;;  %v1121_v7 = vpack.c.bf16 %v1113_v59, %v1113_v59  ;;  %v1420_v8 = vpack.c.bf16 %v1348_v6, %v1348_v6  ;;  %v1349_v16 = vcombine.high %v1324_v0, %v1340_v2  ;;  %v811_v17 = vcombine.high %v791_v45, %v807_v47 }
 0x208   : > { %3144 = vmatmul.mubr.msk.bf16.vlgmr.msra.gmra.mrb[4].mxu1 %vm1428_vm2, %v816_v4  ;;  %3136 = vmatpush3.bf16.xpose.msra.mxu0 %v1571_v48  ;;  %v818_v11 = vpack.c.bf16 %v810_v60, %v810_v60  ;;  %v1123_v62 = vpack.c.bf16 %v1115_v12, %v1115_v12  ;;  %v817_v14 = vpack.c.bf16 %v809_v10, %v809_v10 }
 0x209   : > { %3154 = vmatpush3.bf16.xpose.msra.mxu1 %v1709_v5  ;;  %3137 = vmatprep.mubr.msk.bf16.mxu0 %vm3438_vm0, %v3437_v1  ;;  %v1663_v49 = vsel %vm1428_vm2, %v1121_v7, 0  ;;  %v1882_v13 = vsel %vm1880_vm3, %v1420_v8, 0  ;;  %v1421_v18 = vpack.c.bf16 %v1349_v16, %v1349_v16  ;;  %v819_v19 = vpack.c.bf16 %v811_v17, %v811_v17 }
 0x20a   : > { %3155 = vmatprep.mubr.msk.bf16.mxu1 %vm3438_vm0, %v3437_v1  ;;  %3147 = vmatprep.subr.bf16.mxu0 %v3437_v1  ;;  %v1755_v15 = vsel %vm1428_vm2, %v1123_v62, 0 }
 0x20b   : > { %3165 = vmatprep.subr.bf16.mxu1 %v3437_v1  ;;  %v1928_v20 = vsel %vm1880_vm3, %v1421_v18, 0 }
 0x20f   : > { %3138 = vmatmul.mubr.msk.bf16.vlgmr.msra.gmra.mrb[12].mxu0 %vm1428_vm2, %v815_v9 }
 0x210   : > { %3156 = vmatmul.mubr.msk.bf16.vlgmr.msra.gmra.mrb[8].mxu1 %vm1428_vm2, %v818_v11  ;;  %3148 = vmatpush3.bf16.xpose.msra.mxu0 %v1663_v49  ;;  %v1127_v11 = vpop.permute.xlu1 %1126 }
 0x211   : > { %3166 = vmatpush3.bf16.msra.mxu1 %v1882_v13  ;;  %3149 = vmatprep.mubr.msk.bf16.mxu0 %vm3438_vm0, %v3437_v1 }
 0x212   : > { %3159 = vmatprep.subr.bf16.mxu0 %v3437_v1  ;;  %3167 = vmatprep.mubr.msk.bf16.mxu1 %vm3438_vm0, %v3437_v1 }
 0x213   : > { %3177 = vmatprep.subr.bf16.mxu1 %v3437_v1 }
 0x217   : > { %3150 = vmatmul.mubr.msk.bf16.vlgmr.msra.gmra.mrb[16].mxu0 %vm1428_vm2, %v817_v14 }
 0x218   : > { %3160 = vmatpush3.bf16.xpose.msra.mxu0 %v1755_v15  ;;  %3161 = vmatprep.mubr.msk.bf16.mxu0 %vm3438_vm0, %v3437_v1  ;;  %v1422_v15 = vpack.c.bf16 %v3786_v56, %v3786_v56 }
 0x219   : > { %3171 = vmatprep.subr.bf16.mxu0 %v3437_v1 }
 0x21f   : > { %3162 = vmatmul.mubr.msk.bf16.vlgmr.msra.gmra.mrb[20].mxu0 %vm1428_vm2, %v819_v19 }
 0x220   : > { %3172 = vmatpush3.bf16.msra.mxu0 %v1928_v20  ;;  %3173 = vmatprep.mubr.msk.bf16.mxu0 %vm3438_vm0, %v3437_v1 }
 0x221   : > { %3183 = vmatprep.subr.bf16.mxu0 %v3437_v1 }
 0x2d2   : > { %v1469_v24 = vpop.f32.mrb[4].mxu0 }
 0x2d3   : > { %v1561_v25 = vpop.f32.mrb[0].mxu1  ;;  %v3121_v26 = vpop.f32.mrb[5].mxu0  ;;  %v1797_v28 = vsel %vm1428_vm2, %v1469_v24, -inf }
 0x2d4   : > { %v3133_v29 = vpop.f32.mrb[1].mxu1  ;;  %1798 = vmax.xlane.f32.xlu0 %v1797_v28  ;;  %v1472_v30 = vpop.f32.mrb[6].mxu0  ;;  %v1803_v35 = vsel %vm1428_vm2, %v1561_v25, -inf }
 0x2d5   : > { %v1564_v31 = vpop.f32.mrb[2].mxu1  ;;  %v3122_v33 = vpop.f32.mrb[7].mxu0  ;;  %v1423_v29 = vpack.c.bf16 %v3788_v57, %v3788_v57 }
 0x2d6   : > { %v3134_v34 = vpop.f32.mrb[3].mxu1 }
 0x2d8   : > { %1804 = vmax.xlane.f32.xlu0 %v1803_v35 }
 0x2da   : > { %v1515_v36 = vpop.f32.mrb[8].mxu0 }
 0x2db   : > { %v1653_v37 = vpop.f32.mrb[4].mxu1  ;;  %v3127_v38 = vpop.f32.mrb[9].mxu0  ;;  %v1800_v39 = vsel %vm1428_vm2, %v1515_v36, -inf }
 0x2dc   : > { %v3145_v40 = vpop.f32.mrb[5].mxu1  ;;  %v1809_v42 = vsel %vm1428_vm2, %v1653_v37, -inf  ;;  %1801 = vmax.xlane.f32.xlu1 %v1800_v39  ;;  %v1518_v43 = vpop.f32.mrb[10].mxu0  ;;  %v2020_v39 = vsel %vm1880_vm3, %v1423_v29, 0 }
 0x2dd   : > { %v1656_v44 = vpop.f32.mrb[6].mxu1  ;;  %1810 = vmax.xlane.f32.xlu0 %v1809_v42  ;;  %v3128_v58 = vpop.f32.mrb[11].mxu0 }
 0x2de   : > { %v3146_v50 = vpop.f32.mrb[7].mxu1 }
 0x2e2   : > { %v1607_v51 = vpop.f32.mrb[12].mxu0 }
 0x2e3   : > { %v3834_v61 = vpop.f32.mrb[8].mxu1  ;;  %v3139_v52 = vpop.f32.mrb[13].mxu0  ;;  %v1806_v53 = vsel %vm1428_vm2, %v1607_v51, -inf }
 0x2e4   : > { %v3157_v21 = vpop.f32.mrb[9].mxu1  ;;  %1807 = vmax.xlane.f32.xlu1 %v1806_v53  ;;  %v1610_v22 = vpop.f32.mrb[14].mxu0  ;;  %v1815_v60 = vsel %vm1428_vm2, %v3834_v61, -inf }
 0x2e5   : > { %v1748_v54 = vpop.f32.mrb[10].mxu1  ;;  %v3140_v55 = vpop.f32.mrb[15].mxu0 }
 0x2e6   : > { %v3158_v63 = vpop.f32.mrb[11].mxu1 }
 0x2ea   : > { %v3837_v0 = vpop.f32.mrb[16].mxu0 }
 0x2eb   : > { %v3151_v2 = vpop.f32.mrb[17].mxu0  ;;  %v1812_v3 = vsel %vm1428_vm2, %v3837_v0, -inf }
 0x2ec   : > { %1813 = vmax.xlane.f32.xlu0 %v1812_v3  ;;  %v1702_v4 = vpop.f32.mrb[18].mxu0 }
 0x2ed   : > { %v3152_v45 = vpop.f32.mrb[19].mxu0 }
 0x2f2   : > { %v3841_v47 = vpop.f32.mrb[20].mxu0 }
 0x2f3   : > { %v3163_v48 = vpop.f32.mrb[21].mxu0  ;;  %v1818_v6 = vsel %vm1428_vm2, %v3841_v47, -inf }
 0x2f4   : > { %v1794_v59 = vpop.f32.mrb[22].mxu0 }
 0x2f5   : > { %1134 = vrot.lane.b32.xlu1 %v3631_v41, %s3445_s16  ;;  %v3164_v5 = vpop.f32.mrb[23].mxu0 }
 0x2f9   : > { %1138 = vrot.lane.b32.xlu1 %v3633_v46, %s3445_s16 }
 0x302   : > { %1130 = vrot.lane.b32.xlu0 %v3621_v32, %s3445_s16  ;;  %s3448_s16 = smov 24  }
 0x31d   : > { %1819 = vmax.xlane.f32.xlu1 %v1818_v6 }
 0x321   : > { %1816 = vmax.xlane.f32.xlu0 %v1815_v60 }
 0x361   : > { %v1799_v7 = vpop.xlane.xlu0 %1798 }
 0x362   : > { %v1821_v8 = vsub.f32 %v1469_v24, %v1799_v7  ;;  %v1974_v24 = vsel %vm1880_vm3, %v1422_v15, 0 }
 0x364   : > { %v1829_v9 = vmul.f32 1.442695, %v1821_v8 }
 0x365   : > { %v1805_v41 = vpop.xlane.xlu0 %1804 }
 0x366   : > { %3332 = vpow2.f32 %v1829_v9  ;;  %v1823_v49 = vsub.f32 %v1561_v25, %v1805_v41 }
 0x368   : > { %v1833_v12 = vmul.f32 1.442695, %v1823_v49 }
 0x369   : > { %v1802_v46 = vpop.xlane.xlu1 %1801 }
 0x36a   : > { %3334 = vpow2.f32 %v1833_v12  ;;  %v1811_v13 = vpop.xlane.xlu0 %1810  ;;  %v1822_v32 = vsub.f32 %v1515_v36, %v1802_v46 }
 0x36b   : > { %v1825_v10 = vsub.f32 %v1653_v37, %v1811_v13 }
 0x36c   : > { %v1831_v62 = vmul.f32 1.442695, %v1822_v32 }
 0x36d   : > { %v1837_v14 = vmul.f32 1.442695, %v1825_v10 }
 0x36e   : > { %3336 = vpow2.f32 %v1831_v62 }
 0x36f   : > { %3338 = vpow2.f32 %v1837_v14 }
 0x370   : > { %v3333_v16 = vpop.eup %3332 }
 0x371   : > { %v1808_v17 = vpop.xlane.xlu1 %1807  ;;  %v1845_v18 = vsel %vm1428_vm2, %v3333_v16, 0.0  ;;  %v1869_v19 = vpack.c.bf16 %v3333_v16, %v3333_v16 }
 0x372   : > { %v1824_v20 = vsub.f32 %v1607_v51, %v1808_v17  ;;  %1846 = vadd.xlane.f32.xlu0 %v1845_v18 }
 0x373   : > { %3168 = vmatmul.mubr.msk.bf16.vlgmr.msra.gmra.mrb[12].mxu1 %vm1428_vm2, %v1869_v19 }
 0x374   : > { %v3335_v25 = vpop.eup %3334  ;;  %v1835_v26 = vmul.f32 1.442695, %v1824_v20  ;;  %3178 = vmatpush3.bf16.msra.mxu1 %v1974_v24  ;;  %3179 = vmatprep.mubr.msk.bf16.mxu1 %vm3438_vm0, %v3437_v1 }
 0x375   : > { %v1851_v28 = vsel %vm1428_vm2, %v3335_v25, 0.0  ;;  %3189 = vmatprep.subr.bf16.mxu1 %v3437_v1  ;;  %v1135_v56 = vpop.permute.xlu1 %1134  ;;  %v1871_v38 = vpack.c.bf16 %v3335_v25, %v3335_v25 }
 0x376   : > { %3340 = vpow2.f32 %v1835_v26  ;;  %1852 = vadd.xlane.f32.xlu1 %v1851_v28  ;;  %v1216_v57 = vcombine.low %v1127_v11, %v1135_v56  ;;  %v1217_v40 = vcombine.high %v1127_v11, %v1135_v56 }
 0x378   : > { %v3337_v30 = vpop.eup %3336  ;;  %v1224_v52 = vrot.slane %v1216_v57, %v3609_v23  ;;  %v1231_v53 = vrot.slane %v1217_v40, %v3609_v23 }
 0x379   : > { %v3864_v31 = vpop.eup %3338  ;;  %v1814_v33 = vpop.xlane.xlu0 %1813  ;;  %v1848_v34 = vsel %vm1428_vm2, %v3337_v30, 0.0  ;;  %v1870_v35 = vpack.c.bf16 %v3337_v30, %v3337_v30 }
 0x37a   : > { %v1826_v36 = vsub.f32 %v3837_v0, %v1814_v33  ;;  %1849 = vadd.xlane.f32.xlu0 %v1848_v34  ;;  %v1857_v37 = vsel %vm1428_vm2, %v3864_v31, 0.0  ;;  %v1139_v43 = vpop.permute.xlu1 %1138  ;;  %v1873_v30 = vpack.c.bf16 %v3864_v31, %v3864_v31 }
 0x37b   : > { %1858 = vadd.xlane.f32.xlu1 %v1857_v37  ;;  %3174 = vmatmul.mubr.msk.bf16.vlgmr.msra.gmra.mrb[24].mxu0 %vm1428_vm2, %v1870_v35 }
 0x37c   : > { %v1839_v42 = vmul.f32 1.442695, %v1826_v36  ;;  %3180 = vmatmul.mubr.msk.bf16.vlgmr.msra.gmra.mrb[16].mxu1 %vm1428_vm2, %v1871_v38  ;;  %3184 = vmatpush3.bf16.msra.mxu0 %v2020_v39 }
 0x37d   : > { %v1131_v44 = vpop.permute.xlu0 %1130  ;;  %3185 = vmatprep.mubr.msk.bf16.mxu0 %vm3438_vm0, %v3437_v1  ;;  %3195 = vmatprep.subr.bf16.mxu0 %v3437_v1 }
 0x37e   : > { %3342 = vpow2.f32 %v1839_v42  ;;  %v1232_v58 = vcombine.low %v1131_v44, %v1139_v43  ;;  %v1233_v50 = vcombine.high %v1131_v44, %v1139_v43  ;;  %3191 = vmatprep.mubr.msk.bf16.mxu1 %vm3438_vm0, %v3437_v1 }
 0x380   : > { %v3341_v51 = vpop.eup %3340  ;;  %v1240_v21 = vrot.slane %v1232_v58, %v3609_v23  ;;  %v1247_v22 = vrot.slane %v1233_v50, %v3609_v23 }
 0x381   : > { %v1854_v54 = vsel %vm1428_vm2, %v3341_v51, 0.0  ;;  %v1872_v55 = vpack.c.bf16 %v3341_v51, %v3341_v51 }
 0x382   : > { %v1248_v63 = vcombine.low %v1224_v52, %v1240_v21  ;;  %v1249_v0 = vcombine.high %v1224_v52, %v1240_v21  ;;  %v1264_v2 = vcombine.low %v1231_v53, %v1247_v22  ;;  %v1265_v3 = vcombine.high %v1231_v53, %v1247_v22  ;;  %1855 = vadd.xlane.f32.xlu0 %v1854_v54 }
 0x383   : > { %3186 = vmatmul.mubr.msk.bf16.vlgmr.msra.gmra.mrb[28].mxu0 %vm1428_vm2, %v1872_v55 }
 0x384   : > { %v1256_v4 = vrot.slane %v1248_v63, %v3615_v27  ;;  %v1263_v45 = vrot.slane %v1249_v0, %v3615_v27  ;;  %v1272_v48 = vrot.slane %v1264_v2, %v3615_v27  ;;  %v1279_v59 = vrot.slane %v1265_v3, %v3615_v27  ;;  %3197 = vmatprep.mubr.msk.bf16.mxu0 %vm3438_vm0, %v3437_v1 }
 0x386   : > { %v1352_v5 = vcombine.low %v1256_v4, %v1263_v45  ;;  %v3010_v6 = vcombine.high %v1256_v4, %v1263_v45  ;;  %v1368_v60 = vcombine.low %v1272_v48, %v1279_v59  ;;  %v3011_v7 = vcombine.high %v1272_v48, %v1279_v59 }
 0x388   : > { %v3343_v8 = vpop.eup %3342  ;;  %v1359_v9 = vrot.slane %v1352_v5, %v3609_v23  ;;  %v1367_v11 = vrot.slane %v3010_v6, %v3609_v23  ;;  %v1375_v41 = vrot.slane %v1368_v60, %v3609_v23  ;;  %v1383_v49 = vrot.slane %v3011_v7, %v3609_v23 }
 0x389   : > { %v1860_v12 = vsel %vm1428_vm2, %v3343_v8, 0.0  ;;  %v1874_v33 = vpack.c.bf16 %v3343_v8, %v3343_v8 }
 0x38a   : > { %1861 = vadd.xlane.f32.xlu0 %v1860_v12  ;;  %v1384_v46 = vcombine.low %v1359_v9, %v1367_v11  ;;  %v1400_v13 = vcombine.low %v1375_v41, %v1383_v49  ;;  %v1385_v32 = vcombine.high %v1359_v9, %v1367_v11  ;;  %v1401_v10 = vcombine.high %v1375_v41, %v1383_v49 }
 0x38c   : > { %v1392_v62 = vrot.slane %v1384_v46, %v3615_v27  ;;  %v1408_v14 = vrot.slane %v1400_v13, %v3615_v27  ;;  %v1399_v15 = vrot.slane %v1385_v32, %v3615_v27  ;;  %v1415_v16 = vrot.slane %v1401_v10, %v3615_v27 }
 0x38e   : > { %v1416_v17 = vcombine.low %v1392_v62, %v1408_v14  ;;  %v1417_v18 = vcombine.high %v1392_v62, %v1408_v14  ;;  %v1418_v19 = vcombine.low %v1399_v15, %v1415_v16  ;;  %v1419_v20 = vcombine.high %v1399_v15, %v1415_v16 }
 0x390   : > { %v1424_v24 = vpack.c.bf16 %v1416_v17, %v1416_v17  ;;  %v1425_v25 = vpack.c.bf16 %v1417_v18, %v1417_v18  ;;  %v1426_v56 = vpack.c.bf16 %v1418_v19, %v1418_v19  ;;  %v1427_v29 = vpack.c.bf16 %v1419_v20, %v1419_v20 }
 0x392   : > { %v2066_v26 = vsel %vm1880_vm3, %v1424_v24, 0  ;;  %v2112_v28 = vsel %vm1880_vm3, %v1425_v25, 0  ;;  %v2158_v34 = vsel %vm1880_vm3, %v1426_v56, 0  ;;  %v2204_v35 = vsel %vm1880_vm3, %v1427_v29, 0 }
 0x393   : > { %3190 = vmatpush3.bf16.msra.mxu1 %v2066_v26  ;;  %3196 = vmatpush3.bf16.msra.mxu0 %v2112_v28 }
 0x394   : > { %3201 = vmatprep.subr.bf16.mxu1 %v3437_v1  ;;  %3207 = vmatprep.subr.bf16.mxu0 %v3437_v1 }
 0x396   : > { %3192 = vmatmul.mubr.msk.bf16.vlgmr.msra.gmra.mrb[20].mxu1 %vm1428_vm2, %v1873_v30  ;;  %3198 = vmatmul.mubr.msk.bf16.vlgmr.msra.gmra.mrb[32].mxu0 %vm1428_vm2, %v1874_v33 }
 0x397   : > { %3202 = vmatpush3.bf16.msra.mxu1 %v2158_v34  ;;  %3208 = vmatpush3.bf16.msra.mxu0 %v2204_v35 }
 0x398   : > { %3209 = vmatprep.mubr.msk.bf16.mxu0 %vm3438_vm0, %v3437_v1  ;;  %3203 = vmatprep.mubr.msk.bf16.mxu1 %vm3438_vm0, %v3437_v1 }
 0x399   : > { %3213 = vmatprep.subr.bf16.mxu1 %v3437_v1  ;;  %3221 = vmatprep.subr.bf16.mxu0 %v3437_v1 }
 0x3aa   : > { %v1820_v31 = vpop.xlane.xlu1 %1819 }
 0x3ab   : > { %v1828_v36 = vsub.f32 %v3841_v47, %v1820_v31 }
 0x3ad   : > { %v1843_v37 = vmul.f32 1.442695, %v1828_v36 }
 0x3ae   : > { %v1817_v38 = vpop.xlane.xlu0 %1816 }
 0x3af   : > { %3344 = vpow2.f32 %v1843_v37  ;;  %v1827_v39 = vsub.f32 %v3834_v61, %v1817_v38 }
 0x3b1   : > { %v1841_v57 = vmul.f32 1.442695, %v1827_v39 }
 0x3b3   : > { %3346 = vpow2.f32 %v1841_v57 }
 0x3b9   : > { %v3345_v40 = vpop.eup %3344 }
 0x3ba   : > { %v1866_v42 = vsel %vm1428_vm2, %v3345_v40, 0.0  ;;  %v1876_v43 = vpack.c.bf16 %v3345_v40, %v3345_v40 }
 0x3bb   : > { %1867 = vadd.xlane.f32.xlu0 %v1866_v42 }
 0x3bc   : > { %3210 = vmatmul.mubr.msk.bf16.vlgmr.msra.gmra.mrb[36].mxu0 %vm1428_vm2, %v1876_v43 }
 0x3bd   : > { %v3347_v44 = vpop.eup %3346  ;;  %3225 = vmatprep.mubr.msk.bf16.mxu0 %vm3438_vm0, %v3437_v1 }
 0x3be   : > { %v1863_v47 = vsel %vm1428_vm2, %v3347_v44, 0.0  ;;  %v1875_v58 = vpack.c.bf16 %v3347_v44, %v3347_v44 }
 0x3bf   : > { %1864 = vadd.xlane.f32.xlu1 %v1863_v47 }
 0x3c0   : > { %3204 = vmatmul.mubr.msk.bf16.vlgmr.msra.gmra.mrb[24].mxu1 %vm1428_vm2, %v1875_v58 }
 0x3c1   : > { %3217 = vmatprep.mubr.msk.bf16.mxu1 %vm3438_vm0, %v3437_v1 }
 0x3ff   : > { %v1847_v61 = vpop.xlane.xlu0 %1846 }
 0x400   : > { %3348 = vrcp.f32 %v1847_v61 }
 0x403   : > { %v1853_v50 = vpop.xlane.xlu1 %1852 }
 0x404   : > { %3350 = vrcp.f32 %v1853_v50 }
 0x407   : > { %v1850_v51 = vpop.xlane.xlu0 %1849 }
 0x408   : > { %3352 = vrcp.f32 %v1850_v51 }
 0x40a   : > { %v3349_v55 = vpop.eup %3348 }
 0x40e   : > { %v3351_v0 = vpop.eup %3350 }
 0x40f   : > { %v1856_v22 = vpop.xlane.xlu0 %1855 }
 0x410   : > { %3354 = vrcp.f32 %v1856_v22 }
 0x412   : > { %v3353_v9 = vpop.eup %3352 }
 0x41a   : > { %v3355_v11 = vpop.eup %3354 }
 0x446   : > { %v1918_v52 = vpop.f32.mrb[12].mxu1 }
 0x447   : > { %v3169_v53 = vpop.f32.mrb[13].mxu1  ;;  %v2254_v4 = vmul.f32 %v3349_v55, %v1918_v52 }
 0x448   : > { %v1921_v21 = vpop.f32.mrb[14].mxu1 }
 0x449   : > { %v3170_v54 = vpop.f32.mrb[15].mxu1 }
 0x44e   : > { %v1964_v63 = vpop.f32.mrb[24].mxu0 }
 0x44f   : > { %v2010_v2 = vpop.f32.mrb[16].mxu1  ;;  %v3175_v3 = vpop.f32.mrb[25].mxu0  ;;  %v2255_v49 = vmul.f32 %v3353_v9, %v1964_v63 }
 0x450   : > { %v2256_v45 = vmul.f32 %v3351_v0, %v2010_v2  ;;  %v3181_v48 = vpop.f32.mrb[17].mxu1  ;;  %v1967_v59 = vpop.f32.mrb[26].mxu0 }
 0x451   : > { %v2013_v5 = vpop.f32.mrb[18].mxu1  ;;  %v3176_v6 = vpop.f32.mrb[27].mxu0 }
 0x452   : > { %v2262_v60 = vcombine.low %v2254_v4, %v2256_v45  ;;  %v2263_v7 = vcombine.high %v2254_v4, %v2256_v45  ;;  %v3182_v8 = vpop.f32.mrb[19].mxu1  ;;  %v1862_v2 = vpop.xlane.xlu0 %1861 }
 0x453   : > { %v1859_v3 = vpop.xlane.xlu1 %1858  ;;  %3356 = vrcp.f32 %v1862_v2  ;;  %v3320_v2 = vld [vmem:[%s4145_s3 + $0x8] sm:$0xff]  }
 0x454   : > { %v2270_v14 = vrot.slane %v2262_v60, %v3609_v23  ;;  %v2277_v15 = vrot.slane %v2263_v7, %v3609_v23 }
 0x456   : > { %v2056_v41 = vpop.f32.mrb[28].mxu0  ;;  %v1868_v4 = vpop.xlane.xlu0 %1867 }
 0x457   : > { %v2257_v12 = vmul.f32 %v3355_v11, %v2056_v41  ;;  %v3187_v46 = vpop.f32.mrb[29].mxu0  ;;  %3358 = vrcp.f32 %v1868_v4  ;;  %v1865_v45 = vpop.xlane.xlu1 %1864 }
 0x458   : > { %v2059_v13 = vpop.f32.mrb[30].mxu0  ;;  %3360 = vrcp.f32 %v1859_v3 }
 0x459   : > { %v2278_v32 = vcombine.low %v2255_v49, %v2257_v12  ;;  %v2279_v10 = vcombine.high %v2255_v49, %v2257_v12  ;;  %v3188_v62 = vpop.f32.mrb[31].mxu0  ;;  %3362 = vrcp.f32 %v1865_v45 }
 0x45b   : > { %v2286_v16 = vrot.slane %v2278_v32, %v3609_v23  ;;  %v2293_v17 = vrot.slane %v2279_v10, %v3609_v23 }
 0x45d   : > { %v2294_v18 = vcombine.low %v2270_v14, %v2286_v16  ;;  %v2295_v19 = vcombine.high %v2270_v14, %v2286_v16  ;;  %v2310_v20 = vcombine.low %v2277_v15, %v2293_v17  ;;  %v2311_v24 = vcombine.high %v2277_v15, %v2293_v17  ;;  %v3357_v48 = vpop.eup %3356 }
 0x45f   : > { %v2302_v25 = vrot.slane %v2294_v18, %v3615_v27  ;;  %v2309_v26 = vrot.slane %v2295_v19, %v3615_v27  ;;  %v2318_v28 = vrot.slane %v2310_v20, %v3615_v27  ;;  %v2325_v56 = vrot.slane %v2311_v24, %v3615_v27 }
 0x461   : > { %v2398_v29 = vcombine.low %v2302_v25, %v2309_v26  ;;  %v3028_v30 = vcombine.high %v2302_v25, %v2309_v26  ;;  %v2414_v33 = vcombine.low %v2318_v28, %v2325_v56  ;;  %v3029_v34 = vcombine.high %v2318_v28, %v2325_v56  ;;  %v3359_v59 = vpop.eup %3358 }
 0x462   : > { %v3361_v9 = vpop.eup %3360 }
 0x463   : > { %v2405_v35 = vrot.slane %v2398_v29, %v3609_v23  ;;  %v2413_v31 = vrot.slane %v3028_v30, %v3609_v23  ;;  %v2421_v36 = vrot.slane %v2414_v33, %v3609_v23  ;;  %v2429_v37 = vrot.slane %v3029_v34, %v3609_v23  ;;  %v3363_v12 = vpop.eup %3362 }
 0x465   : > { %v2431_v38 = vcombine.high %v2405_v35, %v2413_v31  ;;  %v2447_v39 = vcombine.high %v2421_v36, %v2429_v37  ;;  %v2430_v57 = vcombine.low %v2405_v35, %v2413_v31  ;;  %v2446_v40 = vcombine.low %v2421_v36, %v2429_v37  ;;  %v3319_v37 = vld [vmem:[%s4145_s3] sm:$0xff]   ;;  %s4073_s3 = scalar_lea.hbm %s4134_s13, %s3058_s24 }
 0x466   : > { %3214 = vmatpush3.bf16.msra.mxu1 %v3319_v37  ;;  %v3323_v37 = vld [vmem:[%s4130_s9] sm:$0xff]  }
 0x467   : > { %v3938_v42 = vrot.slane %v2431_v38, %v3615_v27  ;;  %v3941_v43 = vrot.slane %v2447_v39, %v3615_v27  ;;  %v3944_v44 = vrot.slane %v2430_v57, %v3615_v27  ;;  %v3947_v47 = vrot.slane %v2446_v40, %v3615_v27  ;;  %3215 = vmatprep.subr.bf16.mxu1 %v3437_v1 }
 0x469   : > { %v2102_v58 = vpop.f32.mrb[20].mxu1  ;;  %v2148_v61 = vpop.f32.mrb[32].mxu0  ;;  %v2464_v50 = vcombine.low %v3938_v42, %v3941_v43  ;;  %v2462_v51 = vcombine.low %v3944_v44, %v3947_v47  ;;  %v2463_v52 = vcombine.high %v3944_v44, %v3947_v47  ;;  %v2465_v53 = vcombine.high %v3938_v42, %v3941_v43  ;;  %v3032_v44 = vld [vmem:[%s4125_s4] ss:$0 sm:$0xff] }
 0x46a   : > { %v3193_v21 = vpop.f32.mrb[21].mxu1  ;;  %v3199_v22 = vpop.f32.mrb[33].mxu0  ;;  %v2259_v6 = vmul.f32 %v3357_v48, %v2148_v61  ;;  %v2258_v13 = vmul.f32 %v3361_v9, %v2102_v58  ;;  %3216 = vmatpush3.bf16.msra.mxu1 %v3320_v2  ;;  %v3372_v47 = vld [vmem:[%s3587_s20] sm:$0xff]  }
 0x46b   : > { %v2105_v54 = vpop.f32.mrb[22].mxu1  ;;  %v2151_v55 = vpop.f32.mrb[34].mxu0  ;;  %3229 = vmatprep.subr.bf16.mxu1 %v3437_v1  ;;  %v3036_v2 = vld [vmem:[%s4126_s5] ss:$0 sm:$0xff] }
 0x46c   : > { %v3194_v63 = vpop.f32.mrb[23].mxu1  ;;  %v3200_v0 = vpop.f32.mrb[35].mxu0 }
 0x48f   : > { %v2240_v5 = vpop.f32.mrb[36].mxu0 }
 0x490   : > { %v2261_v60 = vmul.f32 %v3359_v59, %v2240_v5  ;;  %v3211_v7 = vpop.f32.mrb[37].mxu0 }
 0x491   : > { %v2243_v8 = vpop.f32.mrb[38].mxu0 }
 0x492   : > { %v2346_v11 = vcombine.low %v2259_v6, %v2261_v60  ;;  %v2347_v41 = vcombine.high %v2259_v6, %v2261_v60  ;;  %v3212_v49 = vpop.f32.mrb[39].mxu0 }
 0x493   : > { %v2194_v46 = vpop.f32.mrb[24].mxu1 }
 0x494   : > { %v2260_v32 = vmul.f32 %v3363_v12, %v2194_v46  ;;  %v3205_v10 = vpop.f32.mrb[25].mxu1  ;;  %v2354_v17 = vrot.slane %v2346_v11, %v3609_v23  ;;  %v2361_v18 = vrot.slane %v2347_v41, %v3609_v23 }
 0x495   : > { %v2197_v62 = vpop.f32.mrb[26].mxu1 }
 0x496   : > { %v2330_v14 = vcombine.low %v2258_v13, %v2260_v32  ;;  %v2331_v15 = vcombine.high %v2258_v13, %v2260_v32  ;;  %v3206_v16 = vpop.f32.mrb[27].mxu1  ;;  %v446_v62 = vunpack.c.h.bf16 %v3372_v47 }
 0x498   : > { %v2338_v19 = vrot.slane %v2330_v14, %v3609_v23  ;;  %v2345_v20 = vrot.slane %v2331_v15, %v3609_v23 }
 0x49a   : > { %v2362_v24 = vcombine.low %v2338_v19, %v2354_v17  ;;  %v2363_v25 = vcombine.high %v2338_v19, %v2354_v17  ;;  %v2378_v26 = vcombine.low %v2345_v20, %v2361_v18  ;;  %v2379_v28 = vcombine.high %v2345_v20, %v2361_v18 }
 0x49c   : > { %v2370_v56 = vrot.slane %v2362_v24, %v3615_v27  ;;  %v2377_v29 = vrot.slane %v2363_v25, %v3615_v27  ;;  %v2386_v30 = vrot.slane %v2378_v26, %v3615_v27  ;;  %v2393_v33 = vrot.slane %v2379_v28, %v3615_v27 }
 0x49e   : > { %v2466_v34 = vcombine.low %v2370_v56, %v2377_v29  ;;  %v3030_v35 = vcombine.high %v2370_v56, %v2377_v29  ;;  %v2482_v31 = vcombine.low %v2386_v30, %v2393_v33  ;;  %v3031_v36 = vcombine.high %v2386_v30, %v2393_v33 }
 0x4a0   : > { %v2473_v38 = vrot.slane %v2466_v34, %v3609_v23  ;;  %v2481_v39 = vrot.slane %v3030_v35, %v3609_v23  ;;  %v2489_v57 = vrot.slane %v2482_v31, %v3609_v23  ;;  %v2497_v40 = vrot.slane %v3031_v36, %v3609_v23  ;;  %v3321_v31 = vld [vmem:[%s4128_s7] sm:$0xff]   ;;  %v3322_v36 = vld [vmem:[%s4128_s7 + $0x8] sm:$0xff]  }
 0x4a1   : > { %3222 = vmatpush3.bf16.msra.mxu0 %v3321_v31 }
 0x4a2   : > { %v2499_v58 = vcombine.high %v2473_v38, %v2481_v39  ;;  %v2515_v61 = vcombine.high %v2489_v57, %v2497_v40  ;;  %v2498_v21 = vcombine.low %v2473_v38, %v2481_v39  ;;  %v2514_v22 = vcombine.low %v2489_v57, %v2497_v40  ;;  %3223 = vmatprep.subr.bf16.mxu0 %v3437_v1  ;;  %v3324_v38 = vld [vmem:[%s4130_s9 + $0x8] sm:$0xff]   ;;  %v3325_v39 = vld [vmem:[%s4130_s9 + $0x10] sm:$0xff]   ;;  %v3326_v57 = vld [vmem:[%s4130_s9 + $0x18] sm:$0xff]  }
 0x4a3   : > { %v3327_v40 = vld [vmem:[%s4130_s9 + $0x20] sm:$0xff]  }
 0x4a4   : > { %v2513_v54 = vrot.slane %v2499_v58, %v3615_v27  ;;  %v2529_v55 = vrot.slane %v2515_v61, %v3615_v27  ;;  %v2506_v63 = vrot.slane %v2498_v21, %v3615_v27  ;;  %v2522_v0 = vrot.slane %v2514_v22, %v3615_v27  ;;  %v3328_v58 = vld [vmem:[%s4130_s9 + $0x28] sm:$0xff]  }
 0x4a5   : > { %3224 = vmatpush3.bf16.msra.mxu0 %v3322_v36  ;;  %v3051_v36 = vld [vmem:[%s4132_s11] ss:$0 sm:$0xff] }
 0x4a6   : > { %v2532_v23 = vcombine.low %v2513_v54, %v2529_v55  ;;  %v2531_v3 = vcombine.high %v2506_v63, %v2522_v0  ;;  %v2530_v4 = vcombine.low %v2506_v63, %v2522_v0  ;;  %v2533_v45 = vcombine.high %v2513_v54, %v2529_v55 }
 0x4a8   : > { %v3306_v48 = vpack.i.bf16 %v2532_v23, %v2464_v50  ;;  %v3301_v59 = vpack.i.bf16 %v2531_v3, %v2463_v52  ;;  %v3311_v27 = vpack.i.bf16 %v2533_v45, %v2465_v53 }
 0x4aa   : > { %3307 = vrot.lane.b32.xlu0 %v3306_v48, %s3446_s30  ;;  %3302 = vrot.lane.b32.xlu1 %v3301_v59, %s4135_s15  ;;  %v3037_v48 = vld [vmem:[%s4127_s6] ss:$0 sm:$0xff] }
 0x4ae   : > { %3312 = vrot.lane.b32.xlu1 %v3311_v27, %s3448_s16  ;;  %s432_s16 = sand.u32 1, %s3427_s26  }
 0x4af   : > { %s2992_s15 = sshll.u32 %s432_s16, 4  ;;  %s4079_s29 = scalar_lea.sflag [#allocation3], %s432_s16 }
 0x4b0   : > { %s434_s30 = scalar_lea.vmem [#allocation2], %s2992_s15 }
 0x4b1   : > { %s2926_s0 = sshll.u32 %s434_s30, 4  ;;  %s4076_s0 = int_to_ptr.vmem [resolvable:$true] %s2926_s0 }
 0x4b2   : > { %s3373_s15 = scalar_lea.vmem %s4076_s0, 256  ;;  %p3380_p0 = scmp.lt.s32.totalorder %s4076_s0, %s3378_s2 }
 0x4b3   : > { %p3374_p11 = scmp.ne.s32.totalorder %s4076_s0, %s3373_s15  ;;  %p3381_p1 = scmp.lt.s32.totalorder %s3379_s21, %s3373_s15 }
 0x4b5   : > { %p3375_p12 = pnand %p3374_p11, %p3559_p5  ;;  %p3382_p2 = por %p3381_p1, %p3380_p0 }
 0x4b7   : > { %p3376_p13 = pneg %p3375_p12 }
 0x4b9   : > { %p3383_p3 = pnand %p3382_p2, %p3376_p13 }
 0x51c   : > { %v3308_v5 = vpop.permute.xlu0 %3307  ;;  %v3303_v6 = vpop.permute.xlu1 %3302 }
 0x51d   : > { %v3305_v60 = vunpack.i.h.bf16 %v3303_v6  ;;  %v3304_v7 = vunpack.i.l.bf16 %v3303_v6  ;;  %v3310_v50 = vunpack.i.h.bf16 %v3308_v5  ;;  %v3309_v8 = vunpack.i.l.bf16 %v3308_v5 }
 0x51f   : > { %v2558_v42 = vsel %vm1428_vm2, %v2462_v51, %v3304_v7  ;;  %v2559_v43 = vsel %vm1428_vm2, %v2530_v4, %v3305_v60  ;;  %v445_v51 = vunpack.c.l.bf16 %v3372_v47  ;;  %v3329_v60 = vld [vmem:[%s4130_s9 + $0x30] sm:$0xff]   ;;  %v3330_v7 = vld [vmem:[%s4130_s9 + $0x38] sm:$0xff]  }
 0x520   : > { %v3313_v52 = vpop.permute.xlu1 %3312  ;;  %v2561_v11 = vsel %vm2560_vm4, %v2558_v42, %v3309_v8  ;;  %v2562_v41 = vsel %vm2560_vm4, %v2559_v43, %v3310_v50  ;;  %v3038_v50 = vld [vmem:[%s4129_s8] ss:$0 sm:$0xff] }
 0x521   : > { %v3315_v53 = vunpack.i.h.bf16 %v3313_v52  ;;  %v3314_v9 = vunpack.i.l.bf16 %v3313_v52 }
 0x523   : > { %v2564_v49 = vsel %vm2563_vm5, %v2561_v11, %v3314_v9  ;;  %v2565_v12 = vsel %vm2563_vm5, %v2562_v41, %v3315_v53 }
 0x524   : > { %v2566_v46 = vpack.c.bf16 %v2565_v12, %v2564_v49 }
 0x526   : > { %3218 = vmatmul.mubr.msk.bf16.vlgmr.msra.gmra.mrb[28].mxu1 %vm475_vm1, %v2566_v46 }
 0x527   : > { %3245 = vmatprep.mubr.msk.bf16.mxu1 %vm3438_vm0, %v3437_v1  ;;  %3230 = vmatpush3.bf16.msra.mxu1 %v3323_v37 }
 0x528   : > { %3231 = vmatprep.subr.bf16.mxu1 %v3437_v1 }
 0x52b   : > { %3232 = vmatpush3.bf16.msra.mxu1 %v3324_v38 }
 0x52c   : > { %3233 = vmatprep.subr.bf16.mxu1 %v3437_v1 }
 0x52f   : > { %3234 = vmatpush3.bf16.msra.mxu1 %v3325_v39  ;;  %v3052_v39 = vld [vmem:[%s4133_s12] ss:$0 sm:$0xff] }
 0x530   : > { %3235 = vmatprep.subr.bf16.mxu1 %v3437_v1 }
 0x533   : > { %3236 = vmatpush3.bf16.msra.mxu1 %v3326_v57 }
 0x534   : > { %3237 = vmatprep.subr.bf16.mxu1 %v3437_v1 }
 0x537   : > { %3238 = vmatpush3.bf16.msra.mxu1 %v3327_v40 }
 0x538   : > { %3239 = vmatprep.subr.bf16.mxu1 %v3437_v1 }
 0x53b   : > { %3240 = vmatpush3.bf16.msra.mxu1 %v3328_v58 }
 0x53c   : > { %3241 = vmatprep.subr.bf16.mxu1 %v3437_v1 }
 0x53f   : > { %3242 = vmatpush3.bf16.msra.mxu1 %v3329_v60 }
 0x540   : > { %3243 = vmatprep.subr.bf16.mxu1 %v3437_v1  ;;  %v3042_v1 = vld [vmem:[%s4131_s10] ss:$0 sm:$0xff] }
 0x543   : > { %3244 = vmatpush3.bf16.msra.mxu1 %v3330_v7 }
 0x5f9   : > { %v2627_v13 = vpop.f32.mrb[28].mxu1 }
 0x5fa   : > { %v2628_v32 = vadd.f32 %v3032_v44, %v2627_v13  ;;  %v3219_v10 = vpop.f32.mrb[29].mxu1 }
 0x5fb   : > { %v2630_v14 = vpop.f32.mrb[30].mxu1 }
 0x5fc   : > { %v2631_v15 = vadd.f32 %v3032_v44, %v2630_v14  ;;  %v3220_v16 = vpop.f32.mrb[31].mxu1  ;;  %v2634_v17 = vadd.f32 %v2628_v32, %v445_v51 }
 0x5fe   : > { %v2636_v18 = vsel %vm475_vm1, %v2634_v17, 0.0  ;;  %v2635_v19 = vadd.f32 %v2631_v15, %v446_v62 }
 0x5ff   : > { %2637 = vadd.xlane.f32.xlu1 %v2636_v18 }
 0x600   : > { %v2639_v20 = vsel %vm475_vm1, %v2635_v19, 0.0 }
 0x601   : > { %2640 = vadd.xlane.f32.xlu0 %v2639_v20 }
 0x68c   : > { %v2638_v24 = vpop.xlane.xlu1 %2637 }
 0x68d   : > { %v2643_v25 = vmul.f32 0.03125, %v2638_v24 }
 0x68e   : > { %v2641_v26 = vpop.xlane.xlu0 %2640 }
 0x68f   : > { %v2645_v28 = vsub.f32 %v2634_v17, %v2643_v25  ;;  %v2644_v56 = vmul.f32 0.03125, %v2641_v26 }
 0x691   : > { %v2646_v29 = vsub.f32 %v2635_v19, %v2644_v56  ;;  %v2647_v30 = vmul.f32 %v2645_v28, %v2645_v28 }
 0x693   : > { %v2649_v33 = vsel %vm475_vm1, %v2647_v30, 0.0  ;;  %v2648_v34 = vmul.f32 %v2646_v29, %v2646_v29 }
 0x694   : > { %2650 = vadd.xlane.f32.xlu0 %v2649_v33 }
 0x695   : > { %v2652_v35 = vsel %vm475_vm1, %v2648_v34, 0.0 }
 0x696   : > { %2653 = vadd.xlane.f32.xlu1 %v2652_v35 }
 0x721   : > { %v2651_v61 = vpop.xlane.xlu0 %2650 }
 0x722   : > { %v2655_v21 = vmul.f32 0.03125, %v2651_v61 }
 0x723   : > { %v2654_v22 = vpop.xlane.xlu1 %2653 }
 0x724   : > { %v2657_v54 = vadd.f32 1e-05, %v2655_v21  ;;  %v2656_v55 = vmul.f32 0.03125, %v2654_v22 }
 0x726   : > { %3364 = vrsqrt.f32 %v2657_v54  ;;  %v2658_v63 = vadd.f32 1e-05, %v2656_v55 }
 0x728   : > { %3366 = vrsqrt.f32 %v2658_v63 }
 0x730   : > { %v3365_v0 = vpop.eup %3364 }
 0x731   : > { %v2661_v23 = vmul.f32 %v3365_v0, %v2645_v28 }
 0x732   : > { %v3367_v3 = vpop.eup %3366 }
 0x733   : > { %v2670_v4 = vmul.f32 %v3036_v2, %v2661_v23  ;;  %v2662_v45 = vmul.f32 %v3367_v3, %v2646_v29 }
 0x735   : > { %v2671_v59 = vmul.f32 %v3036_v2, %v2662_v45  ;;  %v2679_v27 = vadd.f32 %v3037_v48, %v2670_v4 }
 0x737   : > { %v2680_v5 = vadd.f32 %v3037_v48, %v2671_v59 }
 0x739   : > { %v2681_v6 = vpack.c.bf16 %v2680_v5, %v2679_v27 }
 0x73b   : > { %3226 = vmatmul.mubr.msk.bf16.vlgmr.msra.gmra.mrb[40].mxu0 %vm475_vm1, %v2681_v6 }
 0x80e   : > { %v2742_v8 = vpop.f32.mrb[40].mxu0 }
 0x80f   : > { %v2743_v42 = vadd.f32 %v3038_v50, %v2742_v8  ;;  %v3227_v43 = vpop.f32.mrb[41].mxu0 }
 0x810   : > { %v2745_v52 = vpop.f32.mrb[42].mxu0 }
 0x811   : > { %v2746_v53 = vadd.f32 %v3038_v50, %v2745_v52  ;;  %v3228_v9 = vpop.f32.mrb[43].mxu0  ;;  %v2749_v11 = vmax.f32 %v2743_v42, 0.0 }
 0x813   : > { %v2750_v41 = vmax.f32 %v2746_v53, 0.0 }
 0x815   : > { %v2751_v49 = vpack.c.bf16 %v2750_v41, %v2749_v11 }
 0x817   : > { %3246 = vmatmul.mubr.bf16.vlgmr.msra.gmra.mrb[32].mxu1 %v2751_v49 }
 0x8ea   : > { %v2857_v12 = vpop.f32.mrb[32].mxu1 }
 0x8eb   : > { %v2858_v46 = vadd.f32 %v3042_v1, %v2857_v12  ;;  %v3247_v44 = vpop.f32.mrb[33].mxu1 }
 0x8ec   : > { %v2860_v47 = vpop.f32.mrb[34].mxu1 }
 0x8ed   : > { %v2861_v51 = vadd.f32 %v3042_v1, %v2860_v47  ;;  %v3248_v13 = vpop.f32.mrb[35].mxu1  ;;  %v2864_v32 = vadd.f32 %v2858_v46, %v2679_v27 }
 0x8ef   : > { %v2866_v10 = vsel %vm475_vm1, %v2864_v32, 0.0  ;;  %v2865_v62 = vadd.f32 %v2861_v51, %v2680_v5 }
 0x8f0   : > { %2867 = vadd.xlane.f32.xlu0 %v2866_v10 }
 0x8f1   : > { %v2869_v14 = vsel %vm475_vm1, %v2865_v62, 0.0 }
 0x8f2   : > { %2870 = vadd.xlane.f32.xlu1 %v2869_v14 }
 0x97d   : > { %v2868_v15 = vpop.xlane.xlu0 %2867 }
 0x97e   : > { %v2872_v16 = vmul.f32 0.03125, %v2868_v15 }
 0x97f   : > { %v2871_v17 = vpop.xlane.xlu1 %2870 }
 0x980   : > { %v2874_v18 = vsub.f32 %v2864_v32, %v2872_v16  ;;  %v2873_v19 = vmul.f32 0.03125, %v2871_v17 }
 0x982   : > { %v2875_v20 = vsub.f32 %v2865_v62, %v2873_v19  ;;  %v2876_v24 = vmul.f32 %v2874_v18, %v2874_v18 }
 0x984   : > { %v2878_v25 = vsel %vm475_vm1, %v2876_v24, 0.0  ;;  %v2877_v26 = vmul.f32 %v2875_v20, %v2875_v20 }
 0x985   : > { %2879 = vadd.xlane.f32.xlu0 %v2878_v25 }
 0x986   : > { %v2881_v28 = vsel %vm475_vm1, %v2877_v26, 0.0 }
 0x987   : > { %2882 = vadd.xlane.f32.xlu1 %v2881_v28 }
 0xa12   : > { %v2880_v56 = vpop.xlane.xlu0 %2879 }
 0xa13   : > { %v2884_v29 = vmul.f32 0.03125, %v2880_v56 }
 0xa14   : > { %v2883_v30 = vpop.xlane.xlu1 %2882 }
 0xa15   : > { %v2886_v33 = vadd.f32 1e-05, %v2884_v29  ;;  %v2885_v34 = vmul.f32 0.03125, %v2883_v30 }
 0xa17   : > { %3368 = vrsqrt.f32 %v2886_v33  ;;  %v2887_v35 = vadd.f32 1e-05, %v2885_v34 }
 0xa19   : > { %3370 = vrsqrt.f32 %v2887_v35 }
 0xa21   : > { %v3369_v31 = vpop.eup %3368 }
 0xa22   : > { %v2890_v37 = vmul.f32 %v3369_v31, %v2874_v18 }
 0xa23   : > { %v3371_v38 = vpop.eup %3370 }
 0xa24   : > { %v2899_v57 = vmul.f32 %v3051_v36, %v2890_v37  ;;  %v2891_v40 = vmul.f32 %v3371_v38, %v2875_v20 }
 0xa26   : > { %v2908_v58 = vadd.f32 %v3052_v39, %v2899_v57  ;;  %v2900_v61 = vmul.f32 %v3051_v36, %v2891_v40 }
 0xa28   : > { %v2909_v21 = vadd.f32 %v3052_v39, %v2900_v61  ;;  %2910 = vst.msk [vmem:[%s434_s30] sm:$0xff] %vm475_vm1, %v2908_v58 }
 0xa2a   : > { %2911 = vst.msk [vmem:[%s434_s30 + $0x8] sm:$0xff] %vm475_vm1, %v2909_v21 }
 0xa2b   : > { %3386 = shalt.err (!%p3383_p3)
}
 0xa2c   : > { %s3387_s16 = scalar_lea.hbm %s4073_s3, 256  ;;  %s3391_s23 = scalar_lea.hbm %s4134_s13, 512 }
 0xa2d   : > { %p3388_p4 = scmp.ne.s32.totalorder %s4073_s3, %s3387_s16  ;;  %p3392_p9 = scmp.lt.u32.totalorder %s4073_s3, %s4134_s13 }
 0xa2e   : > { %p3393_p10 = scmp.lt.u32.totalorder %s3391_s23, %s3387_s16  ;;  %p3395_p12 = scmp.lt.u32.totalorder %s3387_s16, %s4073_s3 }
 0xa2f   : > { %p3389_p7 = pnand %p3388_p4, %p3559_p5 }
 0xa30   : > { %p3394_p11 = por %p3393_p10, %p3392_p9 }
 0xa31   : > { %p3390_p8 = pneg %p3389_p7 }
 0xa32   : > { %p3396_p13 = por %p3395_p12, %p3394_p11 }
 0xa34   : > { %p3397_p0 = pnand %p3396_p13, %p3390_p8 }
 0xa36   : > { %3400 = shalt.err (!%p3397_p0)
}
 0xa37   : > { %s3450_s15 = smov 128   ;;  %s4146_s1 = smov 8  }
 0xa38   : > { %3249 = dma.vmem_to_hbm [thread:$0]  (%p3559_p5), %s4076_s0, 256, %s4073_s3, %s4079_s29, %s3450_s15, %s3450_s15, %s4146_s1  }
 0xa39 PF: > { %p3255_p1 = scmp.ge.s32.totalorder %s3435_s28, 2  ;;  %s2941_s2 = sand.u32 1, %s3423_s25  }
 0xa3a   : > { %s2942_s21 = scalar_lea.sflag [#allocation3], %s2941_s2 }
 0xa3b   : > { %p3252_p2 = pnand %p3255_p1, %p3563_p6 }
 0xa3d   : > { %3418 = dma.done.wait (!%p3252_p2), %s2942_s21, 256  }
 0xa3e   : > { %3420 = vsyncadd (!%p3252_p2), %s2942_s21, 4294967040  ;;  %p23_p3 = scmp.ge.s32.totalorder %s3546_s14, 4   ;;  %s4147_s25 = smov %s3427_s26 }
 0xa3f   : > { %s4148_s26 = smov %s3431_s27  ;;  %s4149_s27 = smov %s3557_s17 }
 0xa40   : > { %s4150_s28 = smov %s3546_s14  ;;  %25 = sbr.rel (!%p23_p3) target bundleno = 8 (0x8), region = 107 }
 0xa47   :  { %2947 = vsyncpa [#allocation3], 1 }
 0xa48   :  { %2949 = vsyncpa [#allocation3 + $0x1], 1 }

</bundles_post_ra>
